<compile_context>
chip_gen: v5e
topology: v5e:2x2
jax: 0.10.0
libtpu: 0.0.40
codegen_flags: <defaults>
</compile_context>

<pallas_src>
import functools

import jax
import jax.numpy as jnp
import numpy as np
from jax.experimental import pallas as pl
from jax.experimental.pallas import tpu as pltpu

# ---------------- WaveNet.__init__ hyper-parameters (small, deterministic) ----
CHANNEL = 16        # channel
KERNEL_SIZE = 2     # kernel_size
STACK_SIZE = 2      # stack_size
LAYER_SIZE = 3      # layer_size
SEQ_LEN = 64        # seqLen
DROPOUT = 0.0       # dropout (identity in eval mode / p=0)
BATCH = 16          # raised from 2: 16*64 = 1024 lanes per call (perf review)

LANE_CHUNK = 512    # lanes per grid step: multiple of 256 (MXU width) and of SEQ_LEN


def _build_dilations(stack_size, layer_size):
    coeff = [2 ** i for i in range(10)]
    return [coeff[j % 10] for _ in range(stack_size) for j in range(layer_size)]


DILATIONS = _build_dilations(STACK_SIZE, LAYER_SIZE)
N_BLOCKS = len(DILATIONS)
RECEPTIVE_FIELD = int(
    np.sum([(KERNEL_SIZE - 1) * 2 ** i for i in range((LAYER_SIZE))] * STACK_SIZE)
    + KERNEL_SIZE)
SKIP_SIZE = SEQ_LEN - RECEPTIVE_FIELD

assert SEQ_LEN & (SEQ_LEN - 1) == 0, "frame mask uses a power-of-two SEQ_LEN"
assert LANE_CHUNK % 256 == 0, "keep chunks a multiple of the 256-wide MXU"
assert LANE_CHUNK % SEQ_LEN == 0, "frames must not be split across chunks"
assert (BATCH * SEQ_LEN) % LANE_CHUNK == 0, "total lanes must tile into chunks"


# ------------------------------- Pallas kernel --------------------------------
def wavenet_kernel(x_ref, tap_w_ref, rs_w_ref, dense_w_ref, out_ref):
    C = CHANNEL
    frame = SEQ_LEN
    lanes = LANE_CHUNK

    # Lane index within each batch frame (SEQ_LEN is a power of two) — hoisted.
    lane_in_frame = (
        jax.lax.broadcasted_iota(jnp.int32, (C, lanes), 1) & (frame - 1))

    def causal_same_conv(h, w_cat_bf16, dilation, l_in):
        """torch Conv1d(padding='same', dilation=d, bias=False) followed by
        [..., :-(k-1)*d], computed on right-aligned frames fully in registers.
        w_cat_bf16 is (C, k*C): the k kernel taps concatenated along K."""
        k = KERNEL_SIZE
        left = ((k - 1) * dilation) // 2
        # Pre-roll mask implements the left zero padding AND blocks cross-frame
        # leakage: everything left of the valid region is forced to 0.
        assert left == 0 or (frame - l_in) >= left
        if left > 0:
            h = jnp.where(lane_in_frame >= (frame - l_in), h, 0.0)
        ops = []
        for j in range(k):
            shift = (k - 1 - j) * dilation + left
            ops.append(pltpu.roll(h, shift, axis=1) if shift > 0 else h)
        # Single-pass bf16 MXU matmul, f32 accumulation.
        op = jnp.concatenate(ops, axis=0).astype(jnp.bfloat16)     # (k*C, lanes)
        return jnp.dot(w_cat_bf16, op, preferred_element_type=jnp.float32)

    x = x_ref[...]                                                 # (C, lanes) f32

    # --- CausalDilatedConv1D(channel, channel, k, dilation=1), bias=False ---
    l_in = frame
    res = causal_same_conv(x, tap_w_ref[0], 1, l_in)
    l_in -= (KERNEL_SIZE - 1) * 1

    # --- StackResidualBloc (unrolled: stack_size * layer_size blocks) ---
    ones_row = jnp.ones((1, lanes), jnp.float32)     # bias-fold augmentation row
    skip_sum = jnp.zeros((C, lanes), jnp.float32)
    for i, d in enumerate(DILATIONS):
        x1 = causal_same_conv(res, tap_w_ref[i + 1], d, l_in)
        l_in -= (KERNEL_SIZE - 1) * d
        x1 = jax.nn.relu(x1) * jnp.tanh(x1)          # elementwise kept in f32
        # TODO(synk): nn.Dropout modelled as identity (eval mode / p=0.0).
        # Fused res+skip 1x1 conv WITH bias: (2C, C+1) @ (C+1, lanes);
        # the trailing ones row turns the bias column into part of the matmul.
        x1a = jnp.concatenate([x1, ones_row], axis=0).astype(jnp.bfloat16)
        y = jnp.dot(rs_w_ref[i], x1a, preferred_element_type=jnp.float32)
        res = y[:C] + res            # right-aligned: x[..., -lout:] add is free
        skip_sum = skip_sum + y[C:]  # [..., -skip:] sliced once in the wrapper

    # --- DenseLayer: mean over stacked skips, then (relu -> shared 1x1) x2 ---
    out = skip_sum * (1.0 / N_BLOCKS)
    dense_w = dense_w_ref[...]                                     # (C, C) bf16
    for _ in range(2):
        out = jax.nn.relu(out).astype(jnp.bfloat16)
        out = jnp.dot(dense_w, out, preferred_element_type=jnp.float32)
    out_ref[...] = out.astype(out_ref.dtype)                       # lane-dense store


# ------------------ one-time weight packing (hoisted out of per-call path) ----
def prepare_params(params):
    """Pack/cast weights once; returns the arrays the kernel consumes."""
    C = CHANNEL
    # Concatenate the k taps along K (causal conv prepended to the dilated convs).
    causal_cat = params['causal_w'].transpose(1, 0, 2).reshape(C, KERNEL_SIZE * C)
    dil_cat = params['dil_w'].transpose(0, 2, 1, 3).reshape(
        N_BLOCKS, C, KERNEL_SIZE * C)
    tap_w = jnp.concatenate([causal_cat[None], dil_cat], axis=0)   # (1+NB, C, 2C)
    # Fuse res/skip 1x1 convs along output channels and fold the bias in as an
    # extra contraction column (multiplied by a ones row in the kernel).
    rs_w = jnp.concatenate([params['res_w'], params['skip_w']], axis=1)   # (NB,2C,C)
    rs_b = jnp.concatenate([params['res_b'], params['skip_b']], axis=1)   # (NB,2C,1)
    rs_w_aug = jnp.concatenate([rs_w, rs_b], axis=2)               # (NB, 2C, C+1)
    return {
        'tap_w': tap_w.astype(jnp.bfloat16),
        'rs_w': rs_w_aug.astype(jnp.bfloat16),
        'dense_w': params['dense_w'].astype(jnp.bfloat16),
    }


@jax.jit
def wavenet_forward(x, packed):
    B, C, L = x.shape
    total = B * L
    assert total % LANE_CHUNK == 0 and LANE_CHUNK % L == 0

    # Fold batch onto the lane axis: lane = b * L + t  -> (C, B*L) = (16, 1024).
    x2d = jnp.transpose(x, (1, 0, 2)).reshape(C, total)
    n_chunks = total // LANE_CHUNK

    out2d = pl.pallas_call(
        wavenet_kernel,
        out_shape=jax.ShapeDtypeStruct((C, total), jnp.float32),
        grid=(n_chunks,),
        in_specs=[
            # Activations: one 512-lane chunk (8 frames) per grid step.
            pl.BlockSpec((C, LANE_CHUNK), lambda i: (0, i)),
            # Weights: full-array blocks, constant block index -> DMA'd once.
            pl.BlockSpec(packed['tap_w'].shape, lambda i: (0, 0, 0)),
            pl.BlockSpec(packed['rs_w'].shape, lambda i: (0, 0, 0)),
            pl.BlockSpec(packed['dense_w'].shape, lambda i: (0, 0)),
        ],
        out_specs=pl.BlockSpec((C, LANE_CHUNK), lambda i: (0, i)),
        compiler_params=pltpu.CompilerParams(
            dimension_semantics=("parallel",)),   # both TCs on v7x megacore
    )(x2d, packed['tap_w'], packed['rs_w'], packed['dense_w'])

    # Frames are right-aligned: the last SKIP_SIZE lanes of each frame hold the
    # valid output.  Slice here (keeps the kernel store lane-dense/unmasked).
    out = out2d.reshape(C, B, L)[:, :, L - SKIP_SIZE:]
    return jnp.transpose(out, (1, 0, 2))                           # (B, C, SKIP)


# --------------------------- pure-JAX reference -------------------------------
def _ref_same_conv(x, w_kcc, dilation):
    # x: (B, C, L); w_kcc: (k, C_out, C_in); torch Conv1d(padding='same').
    k = w_kcc.shape[0]
    total = (k - 1) * dilation
    left = total // 2
    xp = jnp.pad(x, ((0, 0), (0, 0), (left, total - left)))
    L = x.shape[-1]
    out = jnp.zeros((x.shape[0], w_kcc.shape[1], L), jnp.float32)
    for j in range(k):
        out = out + jnp.einsum('oc,bcl->bol', w_kcc[j],
                               xp[..., j * dilation:j * dilation + L],
                               precision=jax.lax.Precision.HIGHEST)
    return out


def _ref_causal(x, w_kcc, dilation):
    ign = (w_kcc.shape[0] - 1) * dilation
    return _ref_same_conv(x, w_kcc, dilation)[..., :-ign]


def reference_forward(x, p):
    mm = functools.partial(jnp.einsum, 'oc,bcl->bol',
                           precision=jax.lax.Precision.HIGHEST)
    h = _ref_causal(x, p['causal_w'], 1)
    skips = []
    for i, d in enumerate(DILATIONS):
        x1 = _ref_causal(h, p['dil_w'][i], d)
        x1 = jax.nn.relu(x1) * jnp.tanh(x1)
        res = mm(p['res_w'][i], x1) + p['res_b'][i][None]
        h = res + h[..., -x1.shape[-1]:]
        sk = mm(p['skip_w'][i], x1) + p['skip_b'][i][None]
        skips.append(sk[..., -SKIP_SIZE:])
    out = jnp.stack(skips, axis=0).mean(axis=0)
    for _ in range(2):
        out = jax.nn.relu(out)
        out = mm(p['dense_w'], out)
    return out


# ----------------------------------- main --------------------------------------
if __name__ == "__main__":
    assert SKIP_SIZE > 0, f"skip size must be positive, got {SKIP_SIZE}"
    key = jax.random.PRNGKey(0)
    ks = jax.random.split(key, 8)
    C = CHANNEL
    scale = 0.2
    # Weight layout: (k, C_out, C_in)  <->  torch Conv1d weight (C_out, C_in, k)
    # transposed to put the kernel tap first; 1x1 convs are plain (C_out, C_in).
    params = {
        'causal_w': jax.random.normal(ks[0], (KERNEL_SIZE, C, C), jnp.float32) * scale,
        'dil_w':    jax.random.normal(ks[1], (N_BLOCKS, KERNEL_SIZE, C, C), jnp.float32) * scale,
        'res_w':    jax.random.normal(ks[2], (N_BLOCKS, C, C), jnp.float32) * scale,
        'res_b':    jax.random.normal(ks[3], (N_BLOCKS, C, 1), jnp.float32) * 0.1,
        'skip_w':   jax.random.normal(ks[4], (N_BLOCKS, C, C), jnp.float32) * scale,
        'skip_b':   jax.random.normal(ks[5], (N_BLOCKS, C, 1), jnp.float32) * 0.1,
        'dense_w':  jax.random.normal(ks[6], (C, C), jnp.float32) * scale,
    }
    x = jax.random.normal(ks[7], (BATCH, C, SEQ_LEN), jnp.float32)

    # One-time weight packing (hoisted out of the per-call jitted path).
    packed = prepare_params(params)
    packed = jax.tree_util.tree_map(jax.block_until_ready, packed)

    out = wavenet_forward(x, packed)
    out = jax.block_until_ready(out)
    assert out.shape == (BATCH, CHANNEL, SKIP_SIZE), out.shape

    ref = reference_forward(x, params)
    max_err = float(jnp.max(jnp.abs(out - ref)))
    # bf16 MXU operands (f32 accumulation) vs an f32 HIGHEST-precision reference
    # across a 15-matmul chain with a growing residual path: a few % absolute
    # error is expected; real layout/indexing bugs produce O(0.1-1) errors.
    if max_err > 5e-2:
        raise AssertionError(f"Pallas kernel mismatch vs reference, max abs err = {max_err}")
    print("KERNEL_OK")
</pallas_src>

<mosaic_0001>
module attributes {stable_mosaic.version = 11 : i64} {
  func.func @wavenet_kernel(%arg0: i32, %arg1: memref<16x512xf32, #tpu.memory_space<vmem>>, %arg2: memref<7x16x32xbf16, #tpu.memory_space<vmem>>, %arg3: memref<6x32x17xbf16, #tpu.memory_space<vmem>>, %arg4: memref<16x16xbf16, #tpu.memory_space<vmem>>, %arg5: memref<16x512xf32, #tpu.memory_space<vmem>>) attributes {dimension_semantics = [#tpu.dimension_semantics<parallel>], iteration_bounds = array<i64: 2>, scalar_prefetch = 0 : i64, scratch_operands = 0 : i64, tpu.core_type = #tpu.core_type<tc>, window_params = [{transform_indices = @transform_0, window_bounds = array<i64: 16, 512>}, {pipeline_mode = #tpu.pipeline_mode<synchronous>, transform_indices = @transform_1, window_bounds = array<i64: 7, 16, 32>}, {pipeline_mode = #tpu.pipeline_mode<synchronous>, transform_indices = @transform_2, window_bounds = array<i64: 6, 32, 17>}, {pipeline_mode = #tpu.pipeline_mode<synchronous>, transform_indices = @transform_3, window_bounds = array<i64: 16, 16>}, {transform_indices = @transform_4, window_bounds = array<i64: 16, 512>}]} {
    %0 = tpu.iota {dimensions = array<i32: 1>} : vector<16x512xi32>
    %c63_i32 = arith.constant 63 : i32
    %1 = vector.broadcast %c63_i32 : i32 to vector<16x512xi32>
    %2 = arith.andi %0, %1 : vector<16x512xi32>
    %c0 = arith.constant 0 : index
    %c0_0 = arith.constant 0 : index
    %3 = vector.load %arg1[%c0, %c0_0] : memref<16x512xf32, #tpu.memory_space<vmem>>, vector<16x512xf32>
    %c0_1 = arith.constant 0 : index
    %c0_2 = arith.constant 0 : index
    %c0_3 = arith.constant 0 : index
    %4 = vector.load %arg2[%c0_1, %c0_2, %c0_3] : memref<7x16x32xbf16, #tpu.memory_space<vmem>>, vector<1x16x32xbf16>
    %5 = vector.shape_cast %4 : vector<1x16x32xbf16> to vector<16x32xbf16>
    %c1_i32 = arith.constant 1 : i32
    %6 = tpu.dynamic_rotate %3 by %c1_i32 dim 1 : vector<16x512xf32>, i32 -> vector<16x512xf32>
    %7 = tpu.concatenate %6, %3 in 0 : vector<16x512xf32>, vector<16x512xf32> -> vector<32x512xf32>
    %8 = arith.truncf %7 : vector<32x512xf32> to vector<32x512xbf16>
    %cst = arith.constant dense<0.000000e+00> : vector<16x512xf32>
    %9 = tpu.matmul %5, %8, %cst {dimension_numbers = #tpu.dot_dimension_numbers<[1], [0], [0], [1], [0, 0, 1, 1], [], []>} : vector<16x32xbf16>, vector<32x512xbf16>, vector<16x512xf32> -> vector<16x512xf32>
    %cst_4 = arith.constant 1.000000e+00 : f32
    %10 = vector.broadcast %cst_4 : f32 to vector<1x512xf32>
    %cst_5 = arith.constant 0.000000e+00 : f32
    %11 = vector.broadcast %cst_5 : f32 to vector<16x512xf32>
    %c1 = arith.constant 1 : index
    %c0_6 = arith.constant 0 : index
    %c0_7 = arith.constant 0 : index
    %12 = vector.load %arg2[%c1, %c0_6, %c0_7] : memref<7x16x32xbf16, #tpu.memory_space<vmem>>, vector<1x16x32xbf16>
    %13 = vector.shape_cast %12 : vector<1x16x32xbf16> to vector<16x32xbf16>
    %c1_i32_8 = arith.constant 1 : i32
    %14 = tpu.dynamic_rotate %9 by %c1_i32_8 dim 1 : vector<16x512xf32>, i32 -> vector<16x512xf32>
    %15 = tpu.concatenate %14, %9 in 0 : vector<16x512xf32>, vector<16x512xf32> -> vector<32x512xf32>
    %16 = arith.truncf %15 : vector<32x512xf32> to vector<32x512xbf16>
    %cst_9 = arith.constant dense<0.000000e+00> : vector<16x512xf32>
    %17 = tpu.matmul %13, %16, %cst_9 {dimension_numbers = #tpu.dot_dimension_numbers<[1], [0], [0], [1], [0, 0, 1, 1], [], []>} : vector<16x32xbf16>, vector<32x512xbf16>, vector<16x512xf32> -> vector<16x512xf32>
    %cst_10 = arith.constant 0.000000e+00 : f32
    %18 = vector.broadcast %cst_10 : f32 to vector<16x512xf32>
    %19 = arith.maximumf %17, %18 : vector<16x512xf32>
    %20 = math.tanh %17 : vector<16x512xf32>
    %21 = arith.mulf %19, %20 : vector<16x512xf32>
    %22 = tpu.concatenate %21, %10 in 0 : vector<16x512xf32>, vector<1x512xf32> -> vector<17x512xf32>
    %23 = arith.truncf %22 : vector<17x512xf32> to vector<17x512xbf16>
    %c0_11 = arith.constant 0 : index
    %c0_12 = arith.constant 0 : index
    %c0_13 = arith.constant 0 : index
    %24 = vector.load %arg3[%c0_11, %c0_12, %c0_13] : memref<6x32x17xbf16, #tpu.memory_space<vmem>>, vector<1x32x17xbf16>
    %25 = vector.shape_cast %24 : vector<1x32x17xbf16> to vector<32x17xbf16>
    %cst_14 = arith.constant dense<0.000000e+00> : vector<32x512xf32>
    %26 = tpu.matmul %25, %23, %cst_14 {dimension_numbers = #tpu.dot_dimension_numbers<[1], [0], [0], [1], [0, 0, 1, 1], [], []>} : vector<32x17xbf16>, vector<17x512xbf16>, vector<32x512xf32> -> vector<32x512xf32>
    %27 = vector.extract_strided_slice %26 {offsets = [0, 0], sizes = [16, 512], strides = [1, 1]} : vector<32x512xf32> to vector<16x512xf32>
    %28 = arith.addf %27, %9 : vector<16x512xf32>
    %29 = vector.extract_strided_slice %26 {offsets = [16, 0], sizes = [16, 512], strides = [1, 1]} : vector<32x512xf32> to vector<16x512xf32>
    %30 = arith.addf %11, %29 : vector<16x512xf32>
    %c2 = arith.constant 2 : index
    %c0_15 = arith.constant 0 : index
    %c0_16 = arith.constant 0 : index
    %31 = vector.load %arg2[%c2, %c0_15, %c0_16] : memref<7x16x32xbf16, #tpu.memory_space<vmem>>, vector<1x16x32xbf16>
    %32 = vector.shape_cast %31 : vector<1x16x32xbf16> to vector<16x32xbf16>
    %c2_i32 = arith.constant 2 : i32
    %33 = vector.broadcast %c2_i32 : i32 to vector<16x512xi32>
    %34 = arith.cmpi sge, %2, %33 : vector<16x512xi32>
    %cst_17 = arith.constant 0.000000e+00 : f32
    %35 = vector.broadcast %cst_17 : f32 to vector<16x512xf32>
    %36 = arith.select %34, %28, %35 : vector<16x512xi1>, vector<16x512xf32>
    %c3_i32 = arith.constant 3 : i32
    %37 = tpu.dynamic_rotate %36 by %c3_i32 dim 1 : vector<16x512xf32>, i32 -> vector<16x512xf32>
    %c1_i32_18 = arith.constant 1 : i32
    %38 = tpu.dynamic_rotate %36 by %c1_i32_18 dim 1 : vector<16x512xf32>, i32 -> vector<16x512xf32>
    %39 = tpu.concatenate %37, %38 in 0 : vector<16x512xf32>, vector<16x512xf32> -> vector<32x512xf32>
    %40 = arith.truncf %39 : vector<32x512xf32> to vector<32x512xbf16>
    %cst_19 = arith.constant dense<0.000000e+00> : vector<16x512xf32>
    %41 = tpu.matmul %32, %40, %cst_19 {dimension_numbers = #tpu.dot_dimension_numbers<[1], [0], [0], [1], [0, 0, 1, 1], [], []>} : vector<16x32xbf16>, vector<32x512xbf16>, vector<16x512xf32> -> vector<16x512xf32>
    %cst_20 = arith.constant 0.000000e+00 : f32
    %42 = vector.broadcast %cst_20 : f32 to vector<16x512xf32>
    %43 = arith.maximumf %41, %42 : vector<16x512xf32>
    %44 = math.tanh %41 : vector<16x512xf32>
    %45 = arith.mulf %43, %44 : vector<16x512xf32>
    %46 = tpu.concatenate %45, %10 in 0 : vector<16x512xf32>, vector<1x512xf32> -> vector<17x512xf32>
    %47 = arith.truncf %46 : vector<17x512xf32> to vector<17x512xbf16>
    %c1_21 = arith.constant 1 : index
    %c0_22 = arith.constant 0 : index
    %c0_23 = arith.constant 0 : index
    %48 = vector.load %arg3[%c1_21, %c0_22, %c0_23] : memref<6x32x17xbf16, #tpu.memory_space<vmem>>, vector<1x32x17xbf16>
    %49 = vector.shape_cast %48 : vector<1x32x17xbf16> to vector<32x17xbf16>
    %cst_24 = arith.constant dense<0.000000e+00> : vector<32x512xf32>
    %50 = tpu.matmul %49, %47, %cst_24 {dimension_numbers = #tpu.dot_dimension_numbers<[1], [0], [0], [1], [0, 0, 1, 1], [], []>} : vector<32x17xbf16>, vector<17x512xbf16>, vector<32x512xf32> -> vector<32x512xf32>
    %51 = vector.extract_strided_slice %50 {offsets = [0, 0], sizes = [16, 512], strides = [1, 1]} : vector<32x512xf32> to vector<16x512xf32>
    %52 = arith.addf %51, %28 : vector<16x512xf32>
    %53 = vector.extract_strided_slice %50 {offsets = [16, 0], sizes = [16, 512], strides = [1, 1]} : vector<32x512xf32> to vector<16x512xf32>
    %54 = arith.addf %30, %53 : vector<16x512xf32>
    %c3 = arith.constant 3 : index
    %c0_25 = arith.constant 0 : index
    %c0_26 = arith.constant 0 : index
    %55 = vector.load %arg2[%c3, %c0_25, %c0_26] : memref<7x16x32xbf16, #tpu.memory_space<vmem>>, vector<1x16x32xbf16>
    %56 = vector.shape_cast %55 : vector<1x16x32xbf16> to vector<16x32xbf16>
    %c4_i32 = arith.constant 4 : i32
    %57 = vector.broadcast %c4_i32 : i32 to vector<16x512xi32>
    %58 = arith.cmpi sge, %2, %57 : vector<16x512xi32>
    %cst_27 = arith.constant 0.000000e+00 : f32
    %59 = vector.broadcast %cst_27 : f32 to vector<16x512xf32>
    %60 = arith.select %58, %52, %59 : vector<16x512xi1>, vector<16x512xf32>
    %c6_i32 = arith.constant 6 : i32
    %61 = tpu.dynamic_rotate %60 by %c6_i32 dim 1 : vector<16x512xf32>, i32 -> vector<16x512xf32>
    %c2_i32_28 = arith.constant 2 : i32
    %62 = tpu.dynamic_rotate %60 by %c2_i32_28 dim 1 : vector<16x512xf32>, i32 -> vector<16x512xf32>
    %63 = tpu.concatenate %61, %62 in 0 : vector<16x512xf32>, vector<16x512xf32> -> vector<32x512xf32>
    %64 = arith.truncf %63 : vector<32x512xf32> to vector<32x512xbf16>
    %cst_29 = arith.constant dense<0.000000e+00> : vector<16x512xf32>
    %65 = tpu.matmul %56, %64, %cst_29 {dimension_numbers = #tpu.dot_dimension_numbers<[1], [0], [0], [1], [0, 0, 1, 1], [], []>} : vector<16x32xbf16>, vector<32x512xbf16>, vector<16x512xf32> -> vector<16x512xf32>
    %cst_30 = arith.constant 0.000000e+00 : f32
    %66 = vector.broadcast %cst_30 : f32 to vector<16x512xf32>
    %67 = arith.maximumf %65, %66 : vector<16x512xf32>
    %68 = math.tanh %65 : vector<16x512xf32>
    %69 = arith.mulf %67, %68 : vector<16x512xf32>
    %70 = tpu.concatenate %69, %10 in 0 : vector<16x512xf32>, vector<1x512xf32> -> vector<17x512xf32>
    %71 = arith.truncf %70 : vector<17x512xf32> to vector<17x512xbf16>
    %c2_31 = arith.constant 2 : index
    %c0_32 = arith.constant 0 : index
    %c0_33 = arith.constant 0 : index
    %72 = vector.load %arg3[%c2_31, %c0_32, %c0_33] : memref<6x32x17xbf16, #tpu.memory_space<vmem>>, vector<1x32x17xbf16>
    %73 = vector.shape_cast %72 : vector<1x32x17xbf16> to vector<32x17xbf16>
    %cst_34 = arith.constant dense<0.000000e+00> : vector<32x512xf32>
    %74 = tpu.matmul %73, %71, %cst_34 {dimension_numbers = #tpu.dot_dimension_numbers<[1], [0], [0], [1], [0, 0, 1, 1], [], []>} : vector<32x17xbf16>, vector<17x512xbf16>, vector<32x512xf32> -> vector<32x512xf32>
    %75 = vector.extract_strided_slice %74 {offsets = [0, 0], sizes = [16, 512], strides = [1, 1]} : vector<32x512xf32> to vector<16x512xf32>
    %76 = arith.addf %75, %52 : vector<16x512xf32>
    %77 = vector.extract_strided_slice %74 {offsets = [16, 0], sizes = [16, 512], strides = [1, 1]} : vector<32x512xf32> to vector<16x512xf32>
    %78 = arith.addf %54, %77 : vector<16x512xf32>
    %c4 = arith.constant 4 : index
    %c0_35 = arith.constant 0 : index
    %c0_36 = arith.constant 0 : index
    %79 = vector.load %arg2[%c4, %c0_35, %c0_36] : memref<7x16x32xbf16, #tpu.memory_space<vmem>>, vector<1x16x32xbf16>
    %80 = vector.shape_cast %79 : vector<1x16x32xbf16> to vector<16x32xbf16>
    %c1_i32_37 = arith.constant 1 : i32
    %81 = tpu.dynamic_rotate %76 by %c1_i32_37 dim 1 : vector<16x512xf32>, i32 -> vector<16x512xf32>
    %82 = tpu.concatenate %81, %76 in 0 : vector<16x512xf32>, vector<16x512xf32> -> vector<32x512xf32>
    %83 = arith.truncf %82 : vector<32x512xf32> to vector<32x512xbf16>
    %cst_38 = arith.constant dense<0.000000e+00> : vector<16x512xf32>
    %84 = tpu.matmul %80, %83, %cst_38 {dimension_numbers = #tpu.dot_dimension_numbers<[1], [0], [0], [1], [0, 0, 1, 1], [], []>} : vector<16x32xbf16>, vector<32x512xbf16>, vector<16x512xf32> -> vector<16x512xf32>
    %cst_39 = arith.constant 0.000000e+00 : f32
    %85 = vector.broadcast %cst_39 : f32 to vector<16x512xf32>
    %86 = arith.maximumf %84, %85 : vector<16x512xf32>
    %87 = math.tanh %84 : vector<16x512xf32>
    %88 = arith.mulf %86, %87 : vector<16x512xf32>
    %89 = tpu.concatenate %88, %10 in 0 : vector<16x512xf32>, vector<1x512xf32> -> vector<17x512xf32>
    %90 = arith.truncf %89 : vector<17x512xf32> to vector<17x512xbf16>
    %c3_40 = arith.constant 3 : index
    %c0_41 = arith.constant 0 : index
    %c0_42 = arith.constant 0 : index
    %91 = vector.load %arg3[%c3_40, %c0_41, %c0_42] : memref<6x32x17xbf16, #tpu.memory_space<vmem>>, vector<1x32x17xbf16>
    %92 = vector.shape_cast %91 : vector<1x32x17xbf16> to vector<32x17xbf16>
    %cst_43 = arith.constant dense<0.000000e+00> : vector<32x512xf32>
    %93 = tpu.matmul %92, %90, %cst_43 {dimension_numbers = #tpu.dot_dimension_numbers<[1], [0], [0], [1], [0, 0, 1, 1], [], []>} : vector<32x17xbf16>, vector<17x512xbf16>, vector<32x512xf32> -> vector<32x512xf32>
    %94 = vector.extract_strided_slice %93 {offsets = [0, 0], sizes = [16, 512], strides = [1, 1]} : vector<32x512xf32> to vector<16x512xf32>
    %95 = arith.addf %94, %76 : vector<16x512xf32>
    %96 = vector.extract_strided_slice %93 {offsets = [16, 0], sizes = [16, 512], strides = [1, 1]} : vector<32x512xf32> to vector<16x512xf32>
    %97 = arith.addf %78, %96 : vector<16x512xf32>
    %c5 = arith.constant 5 : index
    %c0_44 = arith.constant 0 : index
    %c0_45 = arith.constant 0 : index
    %98 = vector.load %arg2[%c5, %c0_44, %c0_45] : memref<7x16x32xbf16, #tpu.memory_space<vmem>>, vector<1x16x32xbf16>
    %99 = vector.shape_cast %98 : vector<1x16x32xbf16> to vector<16x32xbf16>
    %c9_i32 = arith.constant 9 : i32
    %100 = vector.broadcast %c9_i32 : i32 to vector<16x512xi32>
    %101 = arith.cmpi sge, %2, %100 : vector<16x512xi32>
    %cst_46 = arith.constant 0.000000e+00 : f32
    %102 = vector.broadcast %cst_46 : f32 to vector<16x512xf32>
    %103 = arith.select %101, %95, %102 : vector<16x512xi1>, vector<16x512xf32>
    %c3_i32_47 = arith.constant 3 : i32
    %104 = tpu.dynamic_rotate %103 by %c3_i32_47 dim 1 : vector<16x512xf32>, i32 -> vector<16x512xf32>
    %c1_i32_48 = arith.constant 1 : i32
    %105 = tpu.dynamic_rotate %103 by %c1_i32_48 dim 1 : vector<16x512xf32>, i32 -> vector<16x512xf32>
    %106 = tpu.concatenate %104, %105 in 0 : vector<16x512xf32>, vector<16x512xf32> -> vector<32x512xf32>
    %107 = arith.truncf %106 : vector<32x512xf32> to vector<32x512xbf16>
    %cst_49 = arith.constant dense<0.000000e+00> : vector<16x512xf32>
    %108 = tpu.matmul %99, %107, %cst_49 {dimension_numbers = #tpu.dot_dimension_numbers<[1], [0], [0], [1], [0, 0, 1, 1], [], []>} : vector<16x32xbf16>, vector<32x512xbf16>, vector<16x512xf32> -> vector<16x512xf32>
    %cst_50 = arith.constant 0.000000e+00 : f32
    %109 = vector.broadcast %cst_50 : f32 to vector<16x512xf32>
    %110 = arith.maximumf %108, %109 : vector<16x512xf32>
    %111 = math.tanh %108 : vector<16x512xf32>
    %112 = arith.mulf %110, %111 : vector<16x512xf32>
    %113 = tpu.concatenate %112, %10 in 0 : vector<16x512xf32>, vector<1x512xf32> -> vector<17x512xf32>
    %114 = arith.truncf %113 : vector<17x512xf32> to vector<17x512xbf16>
    %c4_51 = arith.constant 4 : index
    %c0_52 = arith.constant 0 : index
    %c0_53 = arith.constant 0 : index
    %115 = vector.load %arg3[%c4_51, %c0_52, %c0_53] : memref<6x32x17xbf16, #tpu.memory_space<vmem>>, vector<1x32x17xbf16>
    %116 = vector.shape_cast %115 : vector<1x32x17xbf16> to vector<32x17xbf16>
    %cst_54 = arith.constant dense<0.000000e+00> : vector<32x512xf32>
    %117 = tpu.matmul %116, %114, %cst_54 {dimension_numbers = #tpu.dot_dimension_numbers<[1], [0], [0], [1], [0, 0, 1, 1], [], []>} : vector<32x17xbf16>, vector<17x512xbf16>, vector<32x512xf32> -> vector<32x512xf32>
    %118 = vector.extract_strided_slice %117 {offsets = [0, 0], sizes = [16, 512], strides = [1, 1]} : vector<32x512xf32> to vector<16x512xf32>
    %119 = arith.addf %118, %95 : vector<16x512xf32>
    %120 = vector.extract_strided_slice %117 {offsets = [16, 0], sizes = [16, 512], strides = [1, 1]} : vector<32x512xf32> to vector<16x512xf32>
    %121 = arith.addf %97, %120 : vector<16x512xf32>
    %c6 = arith.constant 6 : index
    %c0_55 = arith.constant 0 : index
    %c0_56 = arith.constant 0 : index
    %122 = vector.load %arg2[%c6, %c0_55, %c0_56] : memref<7x16x32xbf16, #tpu.memory_space<vmem>>, vector<1x16x32xbf16>
    %123 = vector.shape_cast %122 : vector<1x16x32xbf16> to vector<16x32xbf16>
    %c11_i32 = arith.constant 11 : i32
    %124 = vector.broadcast %c11_i32 : i32 to vector<16x512xi32>
    %125 = arith.cmpi sge, %2, %124 : vector<16x512xi32>
    %cst_57 = arith.constant 0.000000e+00 : f32
    %126 = vector.broadcast %cst_57 : f32 to vector<16x512xf32>
    %127 = arith.select %125, %119, %126 : vector<16x512xi1>, vector<16x512xf32>
    %c6_i32_58 = arith.constant 6 : i32
    %128 = tpu.dynamic_rotate %127 by %c6_i32_58 dim 1 : vector<16x512xf32>, i32 -> vector<16x512xf32>
    %c2_i32_59 = arith.constant 2 : i32
    %129 = tpu.dynamic_rotate %127 by %c2_i32_59 dim 1 : vector<16x512xf32>, i32 -> vector<16x512xf32>
    %130 = tpu.concatenate %128, %129 in 0 : vector<16x512xf32>, vector<16x512xf32> -> vector<32x512xf32>
    %131 = arith.truncf %130 : vector<32x512xf32> to vector<32x512xbf16>
    %cst_60 = arith.constant dense<0.000000e+00> : vector<16x512xf32>
    %132 = tpu.matmul %123, %131, %cst_60 {dimension_numbers = #tpu.dot_dimension_numbers<[1], [0], [0], [1], [0, 0, 1, 1], [], []>} : vector<16x32xbf16>, vector<32x512xbf16>, vector<16x512xf32> -> vector<16x512xf32>
    %cst_61 = arith.constant 0.000000e+00 : f32
    %133 = vector.broadcast %cst_61 : f32 to vector<16x512xf32>
    %134 = arith.maximumf %132, %133 : vector<16x512xf32>
    %135 = math.tanh %132 : vector<16x512xf32>
    %136 = arith.mulf %134, %135 : vector<16x512xf32>
    %137 = tpu.concatenate %136, %10 in 0 : vector<16x512xf32>, vector<1x512xf32> -> vector<17x512xf32>
    %138 = arith.truncf %137 : vector<17x512xf32> to vector<17x512xbf16>
    %c5_62 = arith.constant 5 : index
    %c0_63 = arith.constant 0 : index
    %c0_64 = arith.constant 0 : index
    %139 = vector.load %arg3[%c5_62, %c0_63, %c0_64] : memref<6x32x17xbf16, #tpu.memory_space<vmem>>, vector<1x32x17xbf16>
    %140 = vector.shape_cast %139 : vector<1x32x17xbf16> to vector<32x17xbf16>
    %cst_65 = arith.constant dense<0.000000e+00> : vector<32x512xf32>
    %141 = tpu.matmul %140, %138, %cst_65 {dimension_numbers = #tpu.dot_dimension_numbers<[1], [0], [0], [1], [0, 0, 1, 1], [], []>} : vector<32x17xbf16>, vector<17x512xbf16>, vector<32x512xf32> -> vector<32x512xf32>
    %142 = vector.extract_strided_slice %141 {offsets = [16, 0], sizes = [16, 512], strides = [1, 1]} : vector<32x512xf32> to vector<16x512xf32>
    %143 = arith.addf %121, %142 : vector<16x512xf32>
    %cst_66 = arith.constant 0.166666672 : f32
    %144 = vector.broadcast %cst_66 : f32 to vector<16x512xf32>
    %145 = arith.mulf %143, %144 : vector<16x512xf32>
    %c0_67 = arith.constant 0 : index
    %c0_68 = arith.constant 0 : index
    %146 = vector.load %arg4[%c0_67, %c0_68] : memref<16x16xbf16, #tpu.memory_space<vmem>>, vector<16x16xbf16>
    %cst_69 = arith.constant 0.000000e+00 : f32
    %147 = vector.broadcast %cst_69 : f32 to vector<16x512xf32>
    %148 = arith.maximumf %145, %147 : vector<16x512xf32>
    %149 = arith.truncf %148 : vector<16x512xf32> to vector<16x512xbf16>
    %cst_70 = arith.constant dense<0.000000e+00> : vector<16x512xf32>
    %150 = tpu.matmul %146, %149, %cst_70 {dimension_numbers = #tpu.dot_dimension_numbers<[1], [0], [0], [1], [0, 0, 1, 1], [], []>} : vector<16x16xbf16>, vector<16x512xbf16>, vector<16x512xf32> -> vector<16x512xf32>
    %cst_71 = arith.constant 0.000000e+00 : f32
    %151 = vector.broadcast %cst_71 : f32 to vector<16x512xf32>
    %152 = arith.maximumf %150, %151 : vector<16x512xf32>
    %153 = arith.truncf %152 : vector<16x512xf32> to vector<16x512xbf16>
    %cst_72 = arith.constant dense<0.000000e+00> : vector<16x512xf32>
    %154 = tpu.matmul %146, %153, %cst_72 {dimension_numbers = #tpu.dot_dimension_numbers<[1], [0], [0], [1], [0, 0, 1, 1], [], []>} : vector<16x16xbf16>, vector<16x512xbf16>, vector<16x512xf32> -> vector<16x512xf32>
    %c0_73 = arith.constant 0 : index
    %c0_74 = arith.constant 0 : index
    %155 = vector.load %arg5[%c0_73, %c0_74] : memref<16x512xf32, #tpu.memory_space<vmem>>, vector<16x512xf32>
    tpu.vector_store %arg5[%c0_73, %c0_74], %154 {strides = array<i32>} : memref<16x512xf32, #tpu.memory_space<vmem>>, vector<16x512xf32>,
    return
  }
  func.func @transform_0(%arg0: i32) -> (i32, i32) {
    %c0_i32 = arith.constant 0 : i32
    %c0_i32_0 = arith.constant 0 : i32
    return %c0_i32, %arg0 : i32, i32
  }
  func.func @transform_1(%arg0: i32) -> (i32, i32, i32) {
    %c0_i32 = arith.constant 0 : i32
    %c0_i32_0 = arith.constant 0 : i32
    %c0_i32_1 = arith.constant 0 : i32
    %c0_i32_2 = arith.constant 0 : i32
    return %c0_i32, %c0_i32_0, %c0_i32_1 : i32, i32, i32
  }
  func.func @transform_2(%arg0: i32) -> (i32, i32, i32) {
    %c0_i32 = arith.constant 0 : i32
    %c0_i32_0 = arith.constant 0 : i32
    %c0_i32_1 = arith.constant 0 : i32
    %c0_i32_2 = arith.constant 0 : i32
    return %c0_i32, %c0_i32_0, %c0_i32_1 : i32, i32, i32
  }
  func.func @transform_3(%arg0: i32) -> (i32, i32) {
    %c0_i32 = arith.constant 0 : i32
    %c0_i32_0 = arith.constant 0 : i32
    %c0_i32_1 = arith.constant 0 : i32
    return %c0_i32, %c0_i32_0 : i32, i32
  }
  func.func @transform_4(%arg0: i32) -> (i32, i32) {
    %c0_i32 = arith.constant 0 : i32
    %c0_i32_0 = arith.constant 0 : i32
    return %c0_i32, %arg0 : i32, i32
  }
}

</mosaic_0001>

<bundles_post_ra>
// kernel: wavenet_forward.1
= control target key start
LH: loop header
LB: loop body
LE: loop exit
PB: predicated region body
PF: predicated region fallthrough
CT: control target
= control target key end

     0   :  { %s2816_s15 = smov 0   ;;  %s2818_s16 = smov 0   ;;  %s3618_s0 = inlined_call_operand.vmem [shape: f32[16,1024], index: 0, kind: input, shape index: {}]   ;;  %s3619_s1 = inlined_call_operand.vmem [shape: bf16[7,16,32], index: 1, kind: input, shape index: {}]   ;;  %s3620_s2 = inlined_call_operand.vmem [shape: bf16[6,32,17], index: 2, kind: input, shape index: {}]   ;;  %s3621_s3 = inlined_call_operand.vmem [shape: bf16[16,16], index: 3, kind: input, shape index: {}]   ;;  %s3622_s4 = inlined_call_operand.vmem [shape: f32[16,1024], index: 4, kind: output, shape index: {}]  }
   0x1   :  { %s2820_s17 = smov 0  }
   0x2 LB: > { %s2184_s18 = sadd.s32 4294967295, %s2784_s17   ;;  %s2833_s19 = sadd.s32 1, %s2784_s17   ;;  %s2784_s17 = sphi %s2820_s17, %s3626_s17   ;;  %s2780_s16 = sphi %s2818_s16, %s3625_s16   ;;  %s2776_s15 = sphi %s2816_s15, %s3624_s15  }
   0x3   : > { %s18_s20 = ssub.s32 %s2784_s17, %s2833_s19  ;;  %s21_s21 = sadd.s32 1, %s2780_s16 }
   0x4   : > { %p19_p0 = scmp.eq.s32.totalorder %s18_s20, 0  ;;  %p28_p1 = scmp.ne.s32.totalorder %s2780_s16, %s2776_s15 }
   0x5   : > { %p29_p2 = scmp.eq.s32.totalorder %s2784_s17, 0  ;;  %p121_p3 = scmp.eq.s32.totalorder %s2184_s18, 1 }
   0x6   : > { %s2844_s22 = scalar_select %p19_p0, %s2780_s16, %s21_s21  }
   0x7   : > { %p30_p4 = por %p29_p2, %p28_p1  ;;  %p2846_p5 = por %p121_p3, %p28_p1 }
   0x8   : > { %p2187_p6 = scmp.ge.s32.totalorder %s2784_s17, 2 }
   0xa   : > { %152 = sbr.rel (%p2187_p6) target bundleno = 27 (0x1b), region = 28 }
   0xf   : > { %155 = sbr.rel (!%p30_p4) target bundleno = 27 (0x1b), region = 32  ;;  %s157_s24 = sand.u32 (%p30_p4), 1, %s2780_s16  }
  0x10   : > { %s2395_s25 = sshll.u32 (%p30_p4), %s2784_s17, 5  ;;  %s2188_s26 = sshll.u32 (%p30_p4), %s157_s24, 6 }
  0x11   : > { %s162_s29 = scalar_lea.vmem (%p30_p4), %s3618_s0, %s2395_s25  ;;  %s159_s30 = scalar_lea.vmem (%p30_p4), [#allocation2], %s2188_s26 }
  0x12   : > { %v175_v0 = vld [vmem:[%s162_s29] sm:$0xff] (%p30_p4)  ;;  %v177_v1 = vld [vmem:[%s162_s29 + $0x8] sm:$0xff] (%p30_p4)  ;;  %v179_v2 = vld [vmem:[%s162_s29 + $0x10] sm:$0xff] (%p30_p4) }
  0x13   : > { %176 = vst [vmem:[%s159_s30] sm:$0xff] (%p30_p4), %v175_v0  ;;  %v181_v3 = vld [vmem:[%s162_s29 + $0x18] sm:$0xff] (%p30_p4)  ;;  %v183_v4 = vld [vmem:[%s162_s29 + $0x40] sm:$0xff] (%p30_p4)  ;;  %v185_v5 = vld [vmem:[%s162_s29 + $0x48] sm:$0xff] (%p30_p4) }
  0x14   : > { %178 = vst [vmem:[%s159_s30 + $0x8] sm:$0xff] %v177_v1  ;;  %v187_v6 = vld [vmem:[%s162_s29 + $0x50] sm:$0xff]  ;;  %v189_v7 = vld [vmem:[%s162_s29 + $0x58] sm:$0xff] }
  0x15   : > { %180 = vst [vmem:[%s159_s30 + $0x10] sm:$0xff] %v179_v2 }
  0x16   : > { %182 = vst [vmem:[%s159_s30 + $0x18] sm:$0xff] %v181_v3 }
  0x17   : > { %184 = vst [vmem:[%s159_s30 + $0x20] sm:$0xff] %v183_v4 }
  0x18   : > { %186 = vst [vmem:[%s159_s30 + $0x28] sm:$0xff] %v185_v5 }
  0x19   : > { %188 = vst [vmem:[%s159_s30 + $0x30] sm:$0xff] %v187_v6 }
  0x1a   : > { %190 = vst [vmem:[%s159_s30 + $0x38] sm:$0xff] %v189_v7 }
  0x1b PF: > { %p2191_p7 = scmp.ge.s32.totalorder %s2784_s17, 1  ;;  %p195_p8 = scmp.lt.s32.totalorder %s2784_s17, 3 }
  0x1d   : > { %p196_p9 = pnand %p2191_p7, %p195_p8 }
  0x1e   : > { %s202_s5 = sand.u32 (!%p196_p9), 1, %s2776_s15   ;;  %s2786_s8 = smov (!%p196_p9), 1  }
  0x1f   : > { %199 = sbr.rel (%p196_p9) target bundleno = 3175 (0xc67), region = 55  ;;  %s2859_s6 = sshll.u32 (!%p196_p9), %s202_s5, 6 }
  0x20   : > { %s204_s7 = scalar_lea.vmem (!%p196_p9), [#allocation2], %s2859_s6  ;;  %s2788_s15 = smov (!%p196_p9), 3  }
  0x21   : > { %s2789_s30 = smov (!%p196_p9), 2   ;;  %s2790_s5 = smov (!%p196_p9), 6  }
  0x22   : > { %s3583_s20 = scalar_lea.vmem (!%p196_p9), [#allocation3], %s2859_s6 }
  0x24   : > { %v241_v8 = vld [vmem:[%s204_s7 + $0x18] sm:$0xff]  ;;  %v239_v10 = vld [vmem:[%s204_s7 + $0x8] sm:$0xff]  ;;  %v238_v14 = vld [vmem:[%s204_s7] sm:$0xff]  ;;  %v229_v25 = vlaneseq  ;;  %vm286_vm1 = vcmask 261120   ;;  %vm495_vm2 = vcmask 1040384   ;;  %vm488_vm3 = vcmask 138240  }
  0x25   : > { %v245_v9 = vld [vmem:[%s204_s7 + $0x38] sm:$0xff]  ;;  %v243_v12 = vld [vmem:[%s204_s7 + $0x28] sm:$0xff]  ;;  %v242_v15 = vld [vmem:[%s204_s7 + $0x20] sm:$0xff]  ;;  %s2416_s6 = sshll.u32 (%p2846_p5), %s2184_s18, 5 }
  0x26   : > { %v2456_v11 = vpack.i.bf16 %v245_v9, %v241_v8  ;;  %v2446_v13 = vpack.i.bf16 %v243_v12, %v239_v10  ;;  %v240_v16 = vld [vmem:[%s204_s7 + $0x10] sm:$0xff]  ;;  %v2461_v18 = vpack.i.bf16 %v242_v15, %v238_v14  ;;  %v277_v20 = vpack.c.bf16 %v242_v15, %v238_v14  ;;  %v2396_v49 = vld [vmem:[%s3619_s1] sm:$0xff]  ;;  %s2096_s25 = scalar_lea.vmem (%p2846_p5), %s3622_s4, %s2416_s6 }
  0x27   : > { %v244_v17 = vld [vmem:[%s204_s7 + $0x30] sm:$0xff]  ;;  %v278_v21 = vpack.c.bf16 %v243_v12, %v239_v10  ;;  %v280_v23 = vpack.c.bf16 %v245_v9, %v241_v8  ;;  %v2866_v27 = vand.u32 127, %v229_v25  ;;  %v2397_v12 = vld [vmem:[%s3619_s1 + $0x8] sm:$0xff] }
  0x28   : > { %2457 = vrot.lane.b32.xlu1 %v2456_v11, %s2786_s8  ;;  %2447 = vrot.lane.b32.xlu0 %v2446_v13, %s2786_s8  ;;  %v2451_v19 = vpack.i.bf16 %v244_v17, %v240_v16  ;;  %v279_v22 = vpack.c.bf16 %v244_v17, %v240_v16 }
  0x29   : > { %296 = vmatpush.bf16.msra.mxu0 %v277_v20  ;;  %310 = vmatpush.bf16.msra.mxu1 %v278_v21  ;;  %vm264_vm0 = vcmp.lt.s32.totalorder %v2866_v27, 1  ;;  %vm624_vm8 = vcmp.lt.s32.totalorder %v2866_v27, 3  ;;  %vm926_vm13 = vcmp.lt.s32.totalorder %v2866_v27, 2  ;;  %vm901_vm14 = vcmp.lt.s32.totalorder %v2866_v27, 6 }
  0x2a   : > { %324 = vmatpush.bf16.msra.mxu2 %v279_v22  ;;  %338 = vmatpush.bf16.msra.mxu3 %v280_v23 }
  0x30   : > { %2462 = vrot.lane.b32.xlu1 %v2461_v18, %s2786_s8  ;;  %2452 = vrot.lane.b32.xlu0 %v2451_v19, %s2786_s8 }
  0x9a   : > { %v2458_v24 = vpop.permute.xlu1 %2457  ;;  %v2448_v26 = vpop.permute.xlu0 %2447 }
  0x9b   : > { %v2460_v28 = vunpack.i.h.bf16 %v2458_v24  ;;  %v2459_v29 = vunpack.i.l.bf16 %v2458_v24  ;;  %v2450_v31 = vunpack.i.h.bf16 %v2448_v26  ;;  %v2449_v32 = vunpack.i.l.bf16 %v2448_v26 }
  0xa2   : > { %v2463_v30 = vpop.permute.xlu1 %2462  ;;  %v2453_v33 = vpop.permute.xlu0 %2452 }
  0xa3   : > { %v2465_v34 = vunpack.i.h.bf16 %v2463_v30  ;;  %v2464_v35 = vunpack.i.l.bf16 %v2463_v30  ;;  %v2455_v36 = vunpack.i.h.bf16 %v2453_v33  ;;  %v2454_v37 = vunpack.i.l.bf16 %v2453_v33 }
  0xa5   : > { %v271_v38 = vsel %vm264_vm0, %v2459_v29, %v2464_v35  ;;  %v272_v39 = vsel %vm264_vm0, %v2460_v28, %v2465_v34  ;;  %v269_v40 = vsel %vm264_vm0, %v2464_v35, %v2449_v32  ;;  %v270_v41 = vsel %vm264_vm0, %v2465_v34, %v2450_v31 }
  0xa6   : > { %v273_v42 = vpack.c.bf16 %v272_v39, %v271_v38  ;;  %v274_v43 = vpack.c.bf16 %v270_v41, %v269_v40  ;;  %v267_v44 = vsel %vm264_vm0, %v2449_v32, %v2454_v37  ;;  %v268_v45 = vsel %vm264_vm0, %v2450_v31, %v2455_v36 }
  0xa7   : > { %v275_v46 = vpack.c.bf16 %v268_v45, %v267_v44  ;;  %v265_v47 = vsel %vm264_vm0, %v2454_v37, %v2459_v29  ;;  %v266_v48 = vsel %vm264_vm0, %v2455_v36, %v2460_v28  ;;  %v2787_v29 = vmov 0   ;;  %v2398_v44 = vld [vmem:[%s3620_s2] sm:$0xff] }
  0xa8   : > { %297 = vmatpush.bf16.msra.mxu0 %v273_v42  ;;  %311 = vmatpush.bf16.msra.mxu1 %v274_v43  ;;  %v276_v50 = vpack.c.bf16 %v266_v48, %v265_v47  ;;  %v497_v30 = vsel %vm495_vm2, 65535, %v2787_v29 }
  0xa9   : > { %325 = vmatpush.bf16.msra.mxu2 %v275_v46  ;;  %v2951_v31 = vand.u32 1.0|1.0, %v497_v30 }
  0xaa   : > { %339 = vmatpush.bf16.msra.mxu3 %v276_v50 }
  0xab   : > { %2198 = vmatmul.msk.bf16.vlgmr.msra.gmra.mxu0 %vm286_vm1, %v2396_v49  ;;  %2199 = vmatmul.msk.bf16.vlgmr.msra.gmra.mxu1 %vm286_vm1, %v2396_v49 }
  0xac   : > { %2200 = vmatmul.msk.bf16.vlgmr.msra.gmra.mxu2 %vm286_vm1, %v2396_v49 }
  0xad   : > { %2201 = vmatmul.msk.bf16.vlgmr.msra.gmra.mxu3 %vm286_vm1, %v2396_v49 }
 0x128   : > { %v2892_v51 = vpop.f32.mrf.mxu0  ;;  %v2894_v52 = vpop.f32.mrf.mxu1 }
 0x12f   : > { %v2896_v53 = vpop.f32.mrf.mxu2 }
 0x130   : > { %v2898_v54 = vpop.f32.mrf.mxu3  ;;  %v2900_v55 = vpop.f32.mrf.mxu0 }
 0x131   : > { %v2902_v56 = vpop.f32.mrf.mxu1  ;;  %v2481_v57 = vpack.i.bf16 %v2900_v55, %v2892_v51  ;;  %v377_v58 = vpack.c.bf16 %v2900_v55, %v2892_v51 }
 0x132   : > { %v2466_v59 = vpack.i.bf16 %v2902_v56, %v2894_v52  ;;  %v378_v60 = vpack.c.bf16 %v2902_v56, %v2894_v52 }
 0x133   : > { %2482 = vrot.lane.b32.xlu1 %v2481_v57, %s2786_s8  ;;  %395 = vmatpush.bf16.msrb.mxu0 %v377_v58 }
 0x134   : > { %2467 = vrot.lane.b32.xlu2 %v2466_v59, %s2786_s8  ;;  %409 = vmatpush.bf16.msrb.mxu1 %v378_v60 }
 0x137   : > { %v2914_v61 = vpop.f32.mrf.mxu2 }
 0x138   : > { %v2916_v62 = vpop.f32.mrf.mxu3  ;;  %v379_v63 = vpack.c.bf16 %v2914_v61, %v2896_v53  ;;  %v2471_v2 = vpack.i.bf16 %v2914_v61, %v2896_v53 }
 0x139   : > { %v2476_v0 = vpack.i.bf16 %v2916_v62, %v2898_v54  ;;  %v380_v1 = vpack.c.bf16 %v2916_v62, %v2898_v54 }
 0x13a   : > { %423 = vmatpush.bf16.msrb.mxu2 %v379_v63 }
 0x13b   : > { %2477 = vrot.lane.b32.xlu0 %v2476_v0, %s2786_s8  ;;  %437 = vmatpush.bf16.msrb.mxu3 %v380_v1 }
 0x13c   : > { %2472 = vrot.lane.b32.xlu2 %v2471_v2, %s2786_s8 }
 0x18e   : > { %v2468_v3 = vpop.permute.xlu2 %2467 }
 0x18f   : > { %v2470_v5 = vunpack.i.h.bf16 %v2468_v3  ;;  %v2469_v6 = vunpack.i.l.bf16 %v2468_v3 }
 0x196   : > { %v2473_v4 = vpop.permute.xlu2 %2472 }
 0x197   : > { %v2475_v7 = vunpack.i.h.bf16 %v2473_v4  ;;  %v2474_v8 = vunpack.i.l.bf16 %v2473_v4 }
 0x199   : > { %v367_v9 = vsel %vm264_vm0, %v2469_v6, %v2474_v8  ;;  %v368_v10 = vsel %vm264_vm0, %v2470_v5, %v2475_v7 }
 0x19a   : > { %v375_v11 = vpack.c.bf16 %v368_v10, %v367_v9 }
 0x19c   : > { %424 = vmatpush.bf16.msrb.mxu2 %v375_v11 }
 0x19f   : > { %2210 = vmatmul.msk.bf16.vlgmr.msrb.gmra.mxu2 %vm286_vm1, %v2397_v12 }
 0x1a0   : > { %545 = vmatpush.bf16.msra.mxu2 %v2951_v31 }
 0x1a5   : > { %v2483_v13 = vpop.permute.xlu1 %2482 }
 0x1a6   : > { %v2485_v14 = vunpack.i.h.bf16 %v2483_v13  ;;  %v2484_v15 = vunpack.i.l.bf16 %v2483_v13  ;;  %v232_v13 = vadd.s32 256, %v2866_v27 }
 0x1a8   : > { %v369_v16 = vsel %vm264_vm0, %v2484_v15, %v2469_v6  ;;  %v370_v17 = vsel %vm264_vm0, %v2485_v14, %v2470_v5 }
 0x1a9   : > { %v374_v18 = vpack.c.bf16 %v370_v17, %v369_v16  ;;  %v231_v16 = vadd.s32 128, %v2866_v27 }
 0x1ab   : > { %410 = vmatpush.bf16.msrb.mxu1 %v374_v18 }
 0x1ad   : > { %v2478_v19 = vpop.permute.xlu0 %2477 }
 0x1ae   : > { %v2480_v20 = vunpack.i.h.bf16 %v2478_v19  ;;  %v2479_v21 = vunpack.i.l.bf16 %v2478_v19  ;;  %2209 = vmatmul.msk.bf16.vlgmr.msrb.gmra.mxu1 %vm286_vm1, %v2397_v12  ;;  %v2972_v19 = vand.u32 63, %v231_v16 }
 0x1af   : > { %526 = vmatpush.bf16.msra.mxu1 %v2951_v31 }
 0x1b0   : > { %v371_v22 = vsel %vm264_vm0, %v2479_v21, %v2484_v15  ;;  %v372_v23 = vsel %vm264_vm0, %v2480_v20, %v2485_v14  ;;  %v365_v24 = vsel %vm264_vm0, %v2474_v8, %v2479_v21  ;;  %v366_v25 = vsel %vm264_vm0, %v2475_v7, %v2480_v20 }
 0x1b1   : > { %v373_v26 = vpack.c.bf16 %v372_v23, %v371_v22  ;;  %v376_v28 = vpack.c.bf16 %v366_v25, %v365_v24  ;;  %v2965_v15 = vand.u32 63, %v232_v13  ;;  %vm597_vm5 = vcmp.ge.s32.totalorder %v2972_v19, 2 }
 0x1b2   : > { %vm874_vm9 = vcmp.ge.s32.totalorder %v2972_v19, 4  ;;  %vm1392_vm2 = vcmp.ge.s32.totalorder %v2972_v19, 9 }
 0x1b3   : > { %396 = vmatpush.bf16.msrb.mxu0 %v373_v26  ;;  %438 = vmatpush.bf16.msrb.mxu3 %v376_v28  ;;  %vm598_vm4 = vcmp.ge.s32.totalorder %v2965_v15, 2  ;;  %vm875_vm10 = vcmp.ge.s32.totalorder %v2965_v15, 4  ;;  %vm1393_vm15 = vcmp.ge.s32.totalorder %v2965_v15, 9 }
 0x1b6   : > { %2208 = vmatmul.msk.bf16.vlgmr.msrb.gmra.mxu0 %vm286_vm1, %v2397_v12  ;;  %2211 = vmatmul.msk.bf16.vlgmr.msrb.gmra.mxu3 %vm286_vm1, %v2397_v12 }
 0x1b7   : > { %507 = vmatpush.bf16.msra.mxu0 %v2951_v31  ;;  %564 = vmatpush.bf16.msra.mxu3 %v2951_v31 }
 0x222   : > { %v426_v32 = vpop.f32.mrf.mxu2 }
 0x223   : > { %2666 = vtanh.f32 %v426_v32  ;;  %v447_v35 = vmax.f32 %v426_v32, 0.0  ;;  %v2991_v32 = vand.u32 63, %v2866_v27 }
 0x225   : > { %vm596_vm6 = vcmp.ge.s32.totalorder %v2991_v32, 2  ;;  %vm873_vm11 = vcmp.ge.s32.totalorder %v2991_v32, 4 }
 0x229   : > { %v2667_v36 = vpop.eup %2666 }
 0x22a   : > { %v428_v33 = vpop.f32.mrf.mxu2  ;;  %v463_v39 = vmul.f32 %v2667_v36, %v447_v35 }
 0x22b   : > { %2668 = vtanh.f32 %v428_v33  ;;  %v412_v34 = vpop.f32.mrf.mxu1  ;;  %v451_v37 = vmax.f32 %v428_v33, 0.0 }
 0x22c   : > { %2670 = vtanh.f32 %v412_v34  ;;  %v446_v45 = vmax.f32 %v412_v34, 0.0  ;;  %v233_v34 = vadd.s32 384, %v2866_v27 }
 0x231   : > { %v2669_v38 = vpop.eup %2668 }
 0x232   : > { %v467_v40 = vmul.f32 %v2669_v38, %v451_v37  ;;  %v2671_v46 = vpop.eup %2670  ;;  %v3005_v38 = vand.u32 63, %v233_v34 }
 0x233   : > { %v398_v41 = vpop.f32.mrf.mxu0  ;;  %v414_v42 = vpop.f32.mrf.mxu1  ;;  %v462_v49 = vmul.f32 %v2671_v46, %v446_v45 }
 0x234   : > { %v471_v43 = vpack.c.bf16 %v467_v40, %v463_v39  ;;  %2672 = vtanh.f32 %v414_v42  ;;  %v450_v47 = vmax.f32 %v414_v42, 0.0  ;;  %v445_v59 = vmax.f32 %v398_v41, 0.0 }
 0x235   : > { %2674 = vtanh.f32 %v398_v41  ;;  %vm599_vm7 = vcmp.ge.s32.totalorder %v3005_v38, 2  ;;  %vm876_vm12 = vcmp.ge.s32.totalorder %v3005_v38, 4 }
 0x236   : > { %546 = vmatpush.bf16.msra.mxu2 %v471_v43 }
 0x239   : > { %v440_v48 = vpop.f32.mrf.mxu3  ;;  %2224 = vmatmul.msk.bf16.vlgmr.msra.gmra.mxu2 %vm488_vm3, %v2398_v44 }
 0x23a   : > { %v2673_v50 = vpop.eup %2672  ;;  %v448_v7 = vmax.f32 %v440_v48, 0.0 }
 0x23b   : > { %v400_v57 = vpop.f32.mrf.mxu0  ;;  %v466_v58 = vmul.f32 %v2673_v50, %v450_v47  ;;  %v2675_v60 = vpop.eup %2674 }
 0x23c   : > { %2676 = vtanh.f32 %v400_v57  ;;  %v449_v0 = vmax.f32 %v400_v57, 0.0  ;;  %v461_v1 = vmul.f32 %v2675_v60, %v445_v59 }
 0x23d   : > { %v470_v63 = vpack.c.bf16 %v466_v58, %v462_v49  ;;  %2678 = vtanh.f32 %v440_v48 }
 0x23f   : > { %527 = vmatpush.bf16.msra.mxu1 %v470_v63 }
 0x241   : > { %v442_v2 = vpop.f32.mrf.mxu3 }
 0x242   : > { %v2677_v3 = vpop.eup %2676  ;;  %2680 = vtanh.f32 %v442_v2  ;;  %2222 = vmatmul.msk.bf16.vlgmr.msra.gmra.mxu1 %vm488_vm3, %v2398_v44  ;;  %v452_v8 = vmax.f32 %v442_v2, 0.0 }
 0x243   : > { %v465_v4 = vmul.f32 %v2677_v3, %v449_v0  ;;  %v2679_v6 = vpop.eup %2678 }
 0x244   : > { %v464_v10 = vmul.f32 %v2679_v6, %v448_v7 }
 0x245   : > { %v469_v5 = vpack.c.bf16 %v465_v4, %v461_v1 }
 0x247   : > { %508 = vmatpush.bf16.msra.mxu0 %v469_v5 }
 0x248   : > { %v2681_v9 = vpop.eup %2680 }
 0x249   : > { %v468_v11 = vmul.f32 %v2681_v9, %v452_v8 }
 0x24a   : > { %2220 = vmatmul.msk.bf16.vlgmr.msra.gmra.mxu0 %vm488_vm3, %v2398_v44 }
 0x24b   : > { %v472_v12 = vpack.c.bf16 %v468_v11, %v464_v10  ;;  %v2400_v11 = vld [vmem:[%s3619_s1 + $0x10] sm:$0xff] }
 0x24d   : > { %565 = vmatpush.bf16.msra.mxu3 %v472_v12 }
 0x250   : > { %2226 = vmatmul.msk.bf16.vlgmr.msra.gmra.mxu3 %vm488_vm3, %v2398_v44 }
 0x2bc   : > { %v548_v14 = vpop.f32.mrf.mxu2 }
 0x2bd   : > { %v2969_v18 = vadd.f32 %v548_v14, %v2896_v53 }
 0x2bf   : > { %v529_v17 = vpop.f32.mrf.mxu1  ;;  %v602_v22 = vsel %vm598_vm4, %v2969_v18, 0.0 }
 0x2c0   : > { %v2979_v23 = vadd.f32 %v529_v17, %v2894_v52 }
 0x2c4   : > { %v550_v20 = vpop.f32.mrf.mxu2 }
 0x2c5   : > { %v2975_v21 = vadd.f32 %v550_v20, %v2914_v61  ;;  %v601_v61 = vsel %vm597_vm5, %v2979_v23, 0.0 }
 0x2c7   : > { %v606_v24 = vsel %vm598_vm4, %v2975_v21, 0.0  ;;  %v510_v25 = vpop.f32.mrf.mxu0  ;;  %v531_v53 = vpop.f32.mrf.mxu1  ;;  %vm1394_vm4 = vcmp.ge.s32.totalorder %v3005_v38, 9 }
 0x2c8   : > { %v2496_v26 = vpack.i.bf16 %v606_v24, %v602_v22  ;;  %v2984_v28 = vadd.f32 %v531_v53, %v2902_v56  ;;  %v2998_v56 = vadd.f32 %v510_v25, %v2892_v51 }
 0x2ca   : > { %2497 = vrot.lane.b32.xlu0 %v2496_v26, %s2786_s8  ;;  %v605_v29 = vsel %vm597_vm5, %v2984_v28, 0.0  ;;  %v600_v37 = vsel %vm596_vm6, %v2998_v56, 0.0  ;;  %vm1391_vm5 = vcmp.ge.s32.totalorder %v2991_v32, 9 }
 0x2cb   : > { %v2486_v30 = vpack.i.bf16 %v605_v29, %v601_v61 }
 0x2cd   : > { %2487 = vrot.lane.b32.xlu2 %v2486_v30, %s2786_s8 }
 0x2cf   : > { %v512_v52 = vpop.f32.mrf.mxu0 }
 0x2d0   : > { %v2994_v33 = vadd.f32 %v512_v52, %v2900_v55 }
 0x2d2   : > { %2507 = vrot.lane.b32.xlu0 %v2496_v26, %s2788_s15  ;;  %v604_v36 = vsel %vm596_vm6, %v2994_v33, 0.0  ;;  %vm1669_vm6 = vcmp.ge.s32.totalorder %v2965_v15, 11 }
 0x2d3   : > { %v567_v35 = vpop.f32.mrf.mxu3  ;;  %v2521_v55 = vpack.i.bf16 %v604_v36, %v600_v37 }
 0x2d4   : > { %v3008_v39 = vadd.f32 %v567_v35, %v2898_v54  ;;  %v2399_v54 = vld [vmem:[%s3620_s2 + $0x8] sm:$0xff] }
 0x2d5   : > { %2492 = vrot.lane.b32.xlu2 %v2486_v30, %s2788_s15  ;;  %2225 = vmatmul.msk.bf16.gmra.mxu2 %vm488_vm3, %v2399_v54 }
 0x2d6   : > { %v603_v41 = vsel %vm599_vm7, %v3008_v39, 0.0  ;;  %2223 = vmatmul.msk.bf16.gmra.mxu1 %vm488_vm3, %v2399_v54  ;;  %2227 = vmatmul.msk.bf16.gmra.mxu3 %vm488_vm3, %v2399_v54 }
 0x2d7   : > { %2221 = vmatmul.msk.bf16.gmra.mxu0 %vm488_vm3, %v2399_v54 }
 0x2da   : > { %2522 = vrot.lane.b32.xlu0 %v2521_v55, %s2788_s15 }
 0x2db   : > { %v569_v51 = vpop.f32.mrf.mxu3 }
 0x2dc   : > { %v3013_v40 = vadd.f32 %v569_v51, %v2916_v62 }
 0x2dd   : > { %2517 = vrot.lane.b32.xlu2 %v2521_v55, %s2786_s8 }
 0x2de   : > { %v607_v42 = vsel %vm599_vm7, %v3013_v40, 0.0  ;;  %vm1670_vm7 = vcmp.ge.s32.totalorder %v3005_v38, 11 }
 0x2df   : > { %v2501_v43 = vpack.i.bf16 %v607_v42, %v603_v41 }
 0x2e1   : > { %2502 = vrot.lane.b32.xlu1 %v2501_v43, %s2786_s8 }
 0x2e9   : > { %2512 = vrot.lane.b32.xlu1 %v2501_v43, %s2788_s15 }
 0x327   : > { %v2488_v62 = vpop.permute.xlu2 %2487 }
 0x328   : > { %v2490_v46 = vunpack.i.h.bf16 %v2488_v62  ;;  %v2489_v47 = vunpack.i.l.bf16 %v2488_v62 }
 0x32f   : > { %v2493_v44 = vpop.permute.xlu2 %2492 }
 0x330   : > { %v2495_v4 = vunpack.i.h.bf16 %v2493_v44  ;;  %v2494_v5 = vunpack.i.l.bf16 %v2493_v44 }
 0x337   : > { %v2518_v45 = vpop.permute.xlu2 %2517 }
 0x338   : > { %v2520_v48 = vunpack.i.h.bf16 %v2518_v45  ;;  %v2519_v49 = vunpack.i.l.bf16 %v2518_v45 }
 0x33a   : > { %v654_v50 = vsel %vm264_vm0, %v2520_v48, %v2490_v46  ;;  %v653_v57 = vsel %vm264_vm0, %v2519_v49, %v2489_v47 }
 0x33b   : > { %v662_v58 = vpack.c.bf16 %v654_v50, %v653_v57 }
 0x33c   : > { %v2498_v59 = vpop.permute.xlu0 %2497 }
 0x33d   : > { %v2500_v60 = vunpack.i.h.bf16 %v2498_v59  ;;  %v2499_v63 = vunpack.i.l.bf16 %v2498_v59  ;;  %693 = vmatpush.bf16.msrb.mxu1 %v662_v58 }
 0x33f   : > { %v651_v0 = vsel %vm264_vm0, %v2489_v47, %v2499_v63  ;;  %v652_v1 = vsel %vm264_vm0, %v2490_v46, %v2500_v60 }
 0x340   : > { %v663_v2 = vpack.c.bf16 %v652_v1, %v651_v0 }
 0x342   : > { %707 = vmatpush.bf16.msrb.mxu2 %v663_v2 }
 0x344   : > { %v2508_v3 = vpop.permute.xlu0 %2507 }
 0x345   : > { %v2510_v6 = vunpack.i.h.bf16 %v2508_v3  ;;  %v2509_v7 = vunpack.i.l.bf16 %v2508_v3 }
 0x347   : > { %v627_v8 = vsel %vm624_vm8, %v2494_v5, %v2509_v7  ;;  %v628_v9 = vsel %vm624_vm8, %v2495_v4, %v2510_v6 }
 0x348   : > { %v659_v10 = vpack.c.bf16 %v628_v9, %v627_v8 }
 0x34a   : > { %708 = vmatpush.bf16.msrb.mxu2 %v659_v10 }
 0x34c   : > { %v2523_v12 = vpop.permute.xlu0 %2522 }
 0x34d   : > { %v2525_v13 = vunpack.i.h.bf16 %v2523_v12  ;;  %v2524_v14 = vunpack.i.l.bf16 %v2523_v12  ;;  %2236 = vmatmul.msk.bf16.vlgmr.msrb.gmra.mxu2 %vm286_vm1, %v2400_v11  ;;  %v2401_v12 = vld [vmem:[%s3620_s2 + $0x10] sm:$0xff] }
 0x34e   : > { %822 = vmatpush.bf16.msra.mxu2 %v2951_v31 }
 0x34f   : > { %v629_v16 = vsel %vm624_vm8, %v2524_v14, %v2494_v5  ;;  %v630_v17 = vsel %vm624_vm8, %v2525_v13, %v2495_v4 }
 0x350   : > { %v658_v20 = vpack.c.bf16 %v630_v17, %v629_v16 }
 0x352   : > { %694 = vmatpush.bf16.msrb.mxu1 %v658_v20 }
 0x353   : > { %v2503_v22 = vpop.permute.xlu1 %2502  ;;  %v3073_v62 = vpop.f32.mrf.mxu1 }
 0x354   : > { %v2505_v24 = vunpack.i.h.bf16 %v2503_v22  ;;  %v2504_v25 = vunpack.i.l.bf16 %v2503_v22  ;;  %v3079_v46 = vpop.f32.mrf.mxu0 }
 0x355   : > { %2235 = vmatmul.msk.bf16.vlgmr.msrb.gmra.mxu1 %vm286_vm1, %v2400_v11 }
 0x356   : > { %803 = vmatpush.bf16.msra.mxu1 %v2951_v31  ;;  %v650_v53 = vsel %vm264_vm0, %v2500_v60, %v2505_v24  ;;  %v649_v26 = vsel %vm264_vm0, %v2499_v63, %v2504_v25  ;;  %v655_v61 = vsel %vm264_vm0, %v2504_v25, %v2519_v49  ;;  %v656_v29 = vsel %vm264_vm0, %v2505_v24, %v2520_v48 }
 0x357   : > { %v661_v30 = vpack.c.bf16 %v656_v29, %v655_v61  ;;  %v664_v52 = vpack.c.bf16 %v650_v53, %v649_v26  ;;  %v2402_v29 = vld [vmem:[%s3620_s2 + $0x18] sm:$0xff] }
 0x358   : > { %v3071_v54 = vpop.f32.mrf.mxu2 }
 0x359   : > { %679 = vmatpush.bf16.msrb.mxu0 %v661_v30  ;;  %721 = vmatpush.bf16.msrb.mxu3 %v664_v52  ;;  %v3081_v49 = vpop.f32.mrf.mxu3 }
 0x35b   : > { %v2513_v34 = vpop.permute.xlu1 %2512  ;;  %v3077_v45 = vpop.f32.mrf.mxu1 }
 0x35c   : > { %v2515_v35 = vunpack.i.h.bf16 %v2513_v34  ;;  %v2514_v36 = vunpack.i.l.bf16 %v2513_v34  ;;  %v3083_v50 = vpop.f32.mrf.mxu0 }
 0x35e   : > { %v631_v37 = vsel %vm624_vm8, %v2514_v36, %v2524_v14  ;;  %v632_v55 = vsel %vm624_vm8, %v2515_v35, %v2525_v13  ;;  %v625_v51 = vsel %vm624_vm8, %v2509_v7, %v2514_v36  ;;  %v626_v41 = vsel %vm624_vm8, %v2510_v6, %v2515_v35 }
 0x35f   : > { %v657_v42 = vpack.c.bf16 %v632_v55, %v631_v37  ;;  %v660_v43 = vpack.c.bf16 %v626_v41, %v625_v51 }
 0x360   : > { %v3075_v44 = vpop.f32.mrf.mxu2 }
 0x361   : > { %680 = vmatpush.bf16.msrb.mxu0 %v657_v42  ;;  %722 = vmatpush.bf16.msrb.mxu3 %v660_v43  ;;  %v3085_v4 = vpop.f32.mrf.mxu3 }
 0x364   : > { %2234 = vmatmul.msk.bf16.vlgmr.msrb.gmra.mxu0 %vm286_vm1, %v2400_v11  ;;  %2237 = vmatmul.msk.bf16.vlgmr.msrb.gmra.mxu3 %vm286_vm1, %v2400_v11 }
 0x365   : > { %784 = vmatpush.bf16.msra.mxu0 %v2951_v31  ;;  %841 = vmatpush.bf16.msra.mxu3 %v2951_v31 }
 0x3d0   : > { %v710_v47 = vpop.f32.mrf.mxu2 }
 0x3d1   : > { %2682 = vtanh.f32 %v710_v47  ;;  %v731_v58 = vmax.f32 %v710_v47, 0.0 }
 0x3d2   : > { %v696_v48 = vpop.f32.mrf.mxu1 }
 0x3d3   : > { %2684 = vtanh.f32 %v696_v48  ;;  %v730_v2 = vmax.f32 %v696_v48, 0.0 }
 0x3d7   : > { %v2683_v60 = vpop.eup %2682 }
 0x3d8   : > { %v712_v57 = vpop.f32.mrf.mxu2  ;;  %v747_v1 = vmul.f32 %v2683_v60, %v731_v58 }
 0x3d9   : > { %2686 = vtanh.f32 %v712_v57  ;;  %v735_v63 = vmax.f32 %v712_v57, 0.0  ;;  %v2685_v0 = vpop.eup %2684 }
 0x3da   : > { %v698_v59 = vpop.f32.mrf.mxu1  ;;  %v746_v9 = vmul.f32 %v2685_v0, %v730_v2 }
 0x3db   : > { %2688 = vtanh.f32 %v698_v59  ;;  %v734_v6 = vmax.f32 %v698_v59, 0.0 }
 0x3df   : > { %v2687_v3 = vpop.eup %2686 }
 0x3e0   : > { %v751_v5 = vmul.f32 %v2687_v3, %v735_v63 }
 0x3e1   : > { %v2689_v7 = vpop.eup %2688  ;;  %v682_v8 = vpop.f32.mrf.mxu0 }
 0x3e2   : > { %v750_v10 = vmul.f32 %v2689_v7, %v734_v6  ;;  %v755_v11 = vpack.c.bf16 %v751_v5, %v747_v1  ;;  %2690 = vtanh.f32 %v682_v8  ;;  %v729_v17 = vmax.f32 %v682_v8, 0.0 }
 0x3e4   : > { %823 = vmatpush.bf16.msra.mxu2 %v755_v11  ;;  %v754_v13 = vpack.c.bf16 %v750_v10, %v746_v9 }
 0x3e6   : > { %804 = vmatpush.bf16.msra.mxu1 %v754_v13 }
 0x3e7   : > { %v724_v14 = vpop.f32.mrf.mxu3  ;;  %2254 = vmatmul.msk.bf16.vlgmr.msra.gmra.mxu2 %vm488_vm3, %v2401_v12 }
 0x3e8   : > { %v2691_v20 = vpop.eup %2690  ;;  %v732_v52 = vmax.f32 %v724_v14, 0.0 }
 0x3e9   : > { %v684_v16 = vpop.f32.mrf.mxu0  ;;  %2252 = vmatmul.msk.bf16.vlgmr.msra.gmra.mxu1 %vm488_vm3, %v2401_v12  ;;  %v745_v53 = vmul.f32 %v2691_v20, %v729_v17 }
 0x3ea   : > { %2692 = vtanh.f32 %v684_v16  ;;  %v733_v22 = vmax.f32 %v684_v16, 0.0 }
 0x3eb   : > { %2694 = vtanh.f32 %v724_v14 }
 0x3ef   : > { %v726_v24 = vpop.f32.mrf.mxu3 }
 0x3f0   : > { %v2693_v25 = vpop.eup %2692  ;;  %2696 = vtanh.f32 %v726_v24  ;;  %v736_v34 = vmax.f32 %v726_v24, 0.0 }
 0x3f1   : > { %v749_v26 = vmul.f32 %v2693_v25, %v733_v22  ;;  %v2695_v30 = vpop.eup %2694 }
 0x3f2   : > { %v748_v36 = vmul.f32 %v2695_v30, %v732_v52 }
 0x3f3   : > { %v753_v61 = vpack.c.bf16 %v749_v26, %v745_v53 }
 0x3f5   : > { %785 = vmatpush.bf16.msra.mxu0 %v753_v61 }
 0x3f6   : > { %v2697_v35 = vpop.eup %2696 }
 0x3f7   : > { %v752_v37 = vmul.f32 %v2697_v35, %v736_v34  ;;  %2255 = vmatmul.msk.bf16.gmra.mxu2 %vm488_vm3, %v2402_v29  ;;  %v2403_v35 = vld [vmem:[%s3619_s1 + $0x18] sm:$0xff] }
 0x3f8   : > { %2250 = vmatmul.msk.bf16.vlgmr.msra.gmra.mxu0 %vm488_vm3, %v2401_v12 }
 0x3f9   : > { %2253 = vmatmul.msk.bf16.gmra.mxu1 %vm488_vm3, %v2402_v29  ;;  %v756_v55 = vpack.c.bf16 %v752_v37, %v748_v36 }
 0x3fb   : > { %842 = vmatpush.bf16.msra.mxu3 %v756_v55 }
 0x3fe   : > { %2256 = vmatmul.msk.bf16.vlgmr.msra.gmra.mxu3 %vm488_vm3, %v2401_v12 }
 0x408   : > { %2251 = vmatmul.msk.bf16.gmra.mxu0 %vm488_vm3, %v2402_v29 }
 0x40e   : > { %2257 = vmatmul.msk.bf16.gmra.mxu3 %vm488_vm3, %v2402_v29 }
 0x466   : > { %v806_v51 = vpop.f32.mrf.mxu1 }
 0x467   : > { %v3102_v42 = vadd.f32 %v806_v51, %v2979_v23 }
 0x469   : > { %v878_v48 = vsel %vm874_vm9, %v3102_v42, 0.0 }
 0x46a   : > { %v825_v41 = vpop.f32.mrf.mxu2 }
 0x46b   : > { %v3110_v57 = vadd.f32 %v825_v41, %v2969_v18 }
 0x46e   : > { %v808_v43 = vpop.f32.mrf.mxu1 }
 0x46f   : > { %v3106_v47 = vadd.f32 %v808_v43, %v2984_v28  ;;  %v879_v28 = vsel %vm875_vm10, %v3110_v57, 0.0 }
 0x471   : > { %v882_v58 = vsel %vm874_vm9, %v3106_v47, 0.0 }
 0x472   : > { %v827_v59 = vpop.f32.mrf.mxu2  ;;  %v2526_v60 = vpack.i.bf16 %v882_v58, %v878_v48 }
 0x473   : > { %v3115_v23 = vadd.f32 %v827_v59, %v2975_v21 }
 0x474   : > { %2527 = vrot.lane.b32.xlu1 %v2526_v60, %s2789_s30 }
 0x475   : > { %v883_v63 = vsel %vm875_vm10, %v3115_v23, 0.0  ;;  %v787_v0 = vpop.f32.mrf.mxu0 }
 0x476   : > { %v2536_v1 = vpack.i.bf16 %v883_v63, %v879_v28  ;;  %v3123_v18 = vadd.f32 %v787_v0, %v2998_v56 }
 0x478   : > { %2537 = vrot.lane.b32.xlu2 %v2536_v1, %s2789_s30  ;;  %v877_v5 = vsel %vm873_vm11, %v3123_v18, 0.0 }
 0x47c   : > { %2532 = vrot.lane.b32.xlu1 %v2526_v60, %s2790_s5 }
 0x47d   : > { %v789_v2 = vpop.f32.mrf.mxu0 }
 0x47e   : > { %v3127_v21 = vadd.f32 %v789_v2, %v2994_v33 }
 0x480   : > { %v881_v3 = vsel %vm873_vm11, %v3127_v21, 0.0  ;;  %2547 = vrot.lane.b32.xlu2 %v2536_v1, %s2790_s5 }
 0x481   : > { %v844_v6 = vpop.f32.mrf.mxu3  ;;  %v2556_v7 = vpack.i.bf16 %v881_v3, %v877_v5 }
 0x482   : > { %v3134_v8 = vadd.f32 %v844_v6, %v3008_v39 }
 0x484   : > { %2557 = vrot.lane.b32.xlu1 %v2556_v7, %s2789_s30  ;;  %v880_v9 = vsel %vm876_vm12, %v3134_v8, 0.0 }
 0x488   : > { %2562 = vrot.lane.b32.xlu2 %v2556_v7, %s2790_s5 }
 0x489   : > { %v846_v56 = vpop.f32.mrf.mxu3 }
 0x48a   : > { %v3139_v33 = vadd.f32 %v846_v56, %v3013_v40 }
 0x48c   : > { %v884_v10 = vsel %vm876_vm12, %v3139_v33, 0.0 }
 0x48d   : > { %v2541_v11 = vpack.i.bf16 %v884_v10, %v880_v9 }
 0x48f   : > { %2542 = vrot.lane.b32.xlu0 %v2541_v11, %s2789_s30 }
 0x497   : > { %2552 = vrot.lane.b32.xlu0 %v2541_v11, %s2790_s5 }
 0x4d2   : > { %v2538_v12 = vpop.permute.xlu2 %2537 }
 0x4d3   : > { %v2540_v13 = vunpack.i.h.bf16 %v2538_v12  ;;  %v2539_v14 = vunpack.i.l.bf16 %v2538_v12 }
 0x4da   : > { %v2548_v24 = vpop.permute.xlu2 %2547 }
 0x4db   : > { %v2550_v53 = vunpack.i.h.bf16 %v2548_v24  ;;  %v2549_v26 = vunpack.i.l.bf16 %v2548_v24 }
 0x4e2   : > { %v2563_v36 = vpop.permute.xlu2 %2562 }
 0x4e3   : > { %v2565_v41 = vunpack.i.h.bf16 %v2563_v36  ;;  %v2564_v43 = vunpack.i.l.bf16 %v2563_v36 }
 0x4e6   : > { %v2528_v39 = vpop.permute.xlu1 %2527 }
 0x4e7   : > { %v2530_v16 = vunpack.i.h.bf16 %v2528_v39  ;;  %v2529_v17 = vunpack.i.l.bf16 %v2528_v39 }
 0x4e9   : > { %v930_v40 = vsel %vm926_vm13, %v2530_v16, %v2540_v13  ;;  %v929_v20 = vsel %vm926_vm13, %v2529_v17, %v2539_v14 }
 0x4ea   : > { %v941_v22 = vpack.c.bf16 %v930_v40, %v929_v20  ;;  %v3190_v20 = vpop.f32.mrf.mxu2 }
 0x4ec   : > { %985 = vmatpush.bf16.msrb.mxu2 %v941_v22  ;;  %v3192_v22 = vpop.f32.mrf.mxu1 }
 0x4ee   : > { %v2533_v25 = vpop.permute.xlu1 %2532 }
 0x4ef   : > { %v2535_v61 = vunpack.i.h.bf16 %v2533_v25  ;;  %v2534_v29 = vunpack.i.l.bf16 %v2533_v25 }
 0x4f1   : > { %v904_v30 = vsel %vm901_vm14, %v2534_v29, %v2549_v26  ;;  %v905_v52 = vsel %vm901_vm14, %v2535_v61, %v2550_v53  ;;  %v906_v60 = vsel %vm901_vm14, %v2564_v43, %v2534_v29  ;;  %v907_v28 = vsel %vm901_vm14, %v2565_v41, %v2535_v61 }
 0x4f2   : > { %v937_v34 = vpack.c.bf16 %v905_v52, %v904_v30  ;;  %v936_v63 = vpack.c.bf16 %v907_v28, %v906_v60  ;;  %v3194_v24 = vpop.f32.mrf.mxu2  ;;  %v3200_v30 = vpop.f32.mrf.mxu3  ;;  %v2404_v60 = vld [vmem:[%s3620_s2 + $0x20] sm:$0xff] }
 0x4f4   : > { %986 = vmatpush.bf16.msrb.mxu2 %v937_v34  ;;  %v3196_v25 = vpop.f32.mrf.mxu1 }
 0x4f6   : > { %v2558_v37 = vpop.permute.xlu1 %2557 }
 0x4f7   : > { %v2560_v55 = vunpack.i.h.bf16 %v2558_v37  ;;  %v2559_v51 = vunpack.i.l.bf16 %v2558_v37  ;;  %2266 = vmatmul.msk.bf16.vlgmr.msrb.gmra.mxu2 %vm286_vm1, %v2403_v35 }
 0x4f8   : > { %1100 = vmatpush.bf16.msra.mxu2 %v2951_v31 }
 0x4f9   : > { %v932_v48 = vsel %vm926_vm13, %v2560_v55, %v2530_v16  ;;  %v931_v58 = vsel %vm926_vm13, %v2559_v51, %v2529_v17 }
 0x4fa   : > { %v940_v59 = vpack.c.bf16 %v932_v48, %v931_v58 }
 0x4fc   : > { %971 = vmatpush.bf16.msrb.mxu1 %v940_v59  ;;  %v3204_v59 = vpop.f32.mrf.mxu3 }
 0x500   : > { %972 = vmatpush.bf16.msrb.mxu1 %v936_v63 }
 0x501   : > { %v2543_v0 = vpop.permute.xlu0 %2542 }
 0x502   : > { %v2545_v1 = vunpack.i.h.bf16 %v2543_v0  ;;  %v2544_v2 = vunpack.i.l.bf16 %v2543_v0 }
 0x503   : > { %2265 = vmatmul.msk.bf16.vlgmr.msrb.gmra.mxu1 %vm286_vm1, %v2403_v35 }
 0x504   : > { %1081 = vmatpush.bf16.msra.mxu1 %v2951_v31  ;;  %v927_v3 = vsel %vm926_vm13, %v2539_v14, %v2544_v2  ;;  %v928_v5 = vsel %vm926_vm13, %v2540_v13, %v2545_v1  ;;  %v933_v6 = vsel %vm926_vm13, %v2544_v2, %v2559_v51  ;;  %v934_v7 = vsel %vm926_vm13, %v2545_v1, %v2560_v55 }
 0x505   : > { %v939_v56 = vpack.c.bf16 %v934_v7, %v933_v6  ;;  %v942_v9 = vpack.c.bf16 %v928_v5, %v927_v3 }
 0x507   : > { %957 = vmatpush.bf16.msrb.mxu0 %v939_v56  ;;  %999 = vmatpush.bf16.msrb.mxu3 %v942_v9 }
 0x509   : > { %v2553_v10 = vpop.permute.xlu0 %2552 }
 0x50a   : > { %v2555_v11 = vunpack.i.h.bf16 %v2553_v10  ;;  %v2554_v12 = vunpack.i.l.bf16 %v2553_v10 }
 0x50c   : > { %v908_v39 = vsel %vm901_vm14, %v2554_v12, %v2564_v43  ;;  %v909_v14 = vsel %vm901_vm14, %v2555_v11, %v2565_v41  ;;  %v902_v13 = vsel %vm901_vm14, %v2549_v26, %v2554_v12  ;;  %v903_v16 = vsel %vm901_vm14, %v2550_v53, %v2555_v11  ;;  %v3198_v26 = vpop.f32.mrf.mxu0  ;;  %v2405_v11 = vld [vmem:[%s3620_s2 + $0x28] sm:$0xff] }
 0x50d   : > { %v935_v17 = vpack.c.bf16 %v909_v14, %v908_v39  ;;  %v938_v40 = vpack.c.bf16 %v903_v16, %v902_v13 }
 0x50f   : > { %958 = vmatpush.bf16.msrb.mxu0 %v935_v17  ;;  %1000 = vmatpush.bf16.msrb.mxu3 %v938_v40 }
 0x512   : > { %2264 = vmatmul.msk.bf16.vlgmr.msrb.gmra.mxu0 %vm286_vm1, %v2403_v35  ;;  %2267 = vmatmul.msk.bf16.vlgmr.msrb.gmra.mxu3 %vm286_vm1, %v2403_v35 }
 0x513   : > { %1062 = vmatpush.bf16.msra.mxu0 %v2951_v31  ;;  %1119 = vmatpush.bf16.msra.mxu3 %v2951_v31 }
 0x514   : > { %v3202_v36 = vpop.f32.mrf.mxu0 }
 0x57a   : > { %v988_v53 = vpop.f32.mrf.mxu2 }
 0x57b   : > { %2698 = vtanh.f32 %v988_v53  ;;  %v1009_v52 = vmax.f32 %v988_v53, 0.0 }
 0x580   : > { %v974_v61 = vpop.f32.mrf.mxu1 }
 0x581   : > { %v2699_v34 = vpop.eup %2698  ;;  %v1008_v43 = vmax.f32 %v974_v61, 0.0 }
 0x582   : > { %v990_v29 = vpop.f32.mrf.mxu2  ;;  %v1025_v37 = vmul.f32 %v2699_v34, %v1009_v52 }
 0x583   : > { %2700 = vtanh.f32 %v990_v29  ;;  %v1013_v35 = vmax.f32 %v990_v29, 0.0 }
 0x584   : > { %2702 = vtanh.f32 %v974_v61 }
 0x588   : > { %v976_v55 = vpop.f32.mrf.mxu1 }
 0x589   : > { %v2701_v51 = vpop.eup %2700  ;;  %2704 = vtanh.f32 %v976_v55  ;;  %v1012_v28 = vmax.f32 %v976_v55, 0.0 }
 0x58a   : > { %v1029_v41 = vmul.f32 %v2701_v51, %v1013_v35  ;;  %v2703_v58 = vpop.eup %2702 }
 0x58b   : > { %v1024_v1 = vmul.f32 %v2703_v58, %v1008_v43 }
 0x58c   : > { %v1033_v48 = vpack.c.bf16 %v1029_v41, %v1025_v37 }
 0x58e   : > { %1101 = vmatpush.bf16.msra.mxu2 %v1033_v48 }
 0x58f   : > { %v2705_v63 = vpop.eup %2704  ;;  %v960_v0 = vpop.f32.mrf.mxu0 }
 0x590   : > { %v1028_v2 = vmul.f32 %v2705_v63, %v1012_v28  ;;  %2706 = vtanh.f32 %v960_v0  ;;  %v1007_v56 = vmax.f32 %v960_v0, 0.0 }
 0x591   : > { %2284 = vmatmul.msk.bf16.vlgmr.msra.gmra.mxu2 %vm488_vm3, %v2404_v60 }
 0x592   : > { %v1032_v3 = vpack.c.bf16 %v1028_v2, %v1024_v1 }
 0x594   : > { %1082 = vmatpush.bf16.msra.mxu1 %v1032_v3 }
 0x595   : > { %v1002_v5 = vpop.f32.mrf.mxu3 }
 0x596   : > { %v2707_v7 = vpop.eup %2706  ;;  %v1010_v14 = vmax.f32 %v1002_v5, 0.0 }
 0x597   : > { %v962_v6 = vpop.f32.mrf.mxu0  ;;  %2282 = vmatmul.msk.bf16.vlgmr.msra.gmra.mxu1 %vm488_vm3, %v2404_v60  ;;  %v1023_v39 = vmul.f32 %v2707_v7, %v1007_v56 }
 0x598   : > { %2708 = vtanh.f32 %v962_v6  ;;  %v1011_v9 = vmax.f32 %v962_v6, 0.0 }
 0x599   : > { %2710 = vtanh.f32 %v1002_v5 }
 0x59d   : > { %v1004_v10 = vpop.f32.mrf.mxu3 }
 0x59e   : > { %v2709_v12 = vpop.eup %2708  ;;  %2712 = vtanh.f32 %v1004_v10  ;;  %v1014_v17 = vmax.f32 %v1004_v10, 0.0 }
 0x59f   : > { %v1027_v13 = vmul.f32 %v2709_v12, %v1011_v9  ;;  %v2711_v16 = vpop.eup %2710 }
 0x5a0   : > { %v1026_v53 = vmul.f32 %v2711_v16, %v1010_v14 }
 0x5a1   : > { %2285 = vmatmul.msk.bf16.gmra.mxu2 %vm488_vm3, %v2405_v11  ;;  %v1031_v40 = vpack.c.bf16 %v1027_v13, %v1023_v39 }
 0x5a3   : > { %1063 = vmatpush.bf16.msra.mxu0 %v1031_v40 }
 0x5a4   : > { %v2713_v61 = vpop.eup %2712 }
 0x5a5   : > { %v1030_v29 = vmul.f32 %v2713_v61, %v1014_v17 }
 0x5a6   : > { %2280 = vmatmul.msk.bf16.vlgmr.msra.gmra.mxu0 %vm488_vm3, %v2404_v60 }
 0x5a7   : > { %2283 = vmatmul.msk.bf16.gmra.mxu1 %vm488_vm3, %v2405_v11  ;;  %v1034_v52 = vpack.c.bf16 %v1030_v29, %v1026_v53 }
 0x5a9   : > { %1120 = vmatpush.bf16.msra.mxu3 %v1034_v52 }
 0x5ac   : > { %2286 = vmatmul.msk.bf16.vlgmr.msra.gmra.mxu3 %vm488_vm3, %v2404_v60 }
 0x5b6   : > { %2281 = vmatmul.msk.bf16.gmra.mxu0 %vm488_vm3, %v2405_v11 }
 0x5bc   : > { %2287 = vmatmul.msk.bf16.gmra.mxu3 %vm488_vm3, %v2405_v11 }
 0x614   : > { %v1084_v34 = vpop.f32.mrf.mxu1  ;;  %v1103_v35 = vpop.f32.mrf.mxu2 }
 0x615   : > { %v3221_v51 = vadd.f32 %v1084_v34, %v3102_v42  ;;  %v3224_v41 = vadd.f32 %v1103_v35, %v3110_v57  ;;  %v864_v57 = vadd.f32 %v3190_v20, %v3071_v54  ;;  %v2406_v34 = vld [vmem:[%s3619_s1 + $0x20] sm:$0xff] }
 0x61c   : > { %v1086_v37 = vpop.f32.mrf.mxu1  ;;  %v1105_v55 = vpop.f32.mrf.mxu2 }
 0x61d   : > { %v3227_v43 = vadd.f32 %v1086_v37, %v3106_v47  ;;  %v3230_v48 = vadd.f32 %v1105_v55, %v3115_v23  ;;  %v863_v47 = vadd.f32 %v3192_v22, %v3073_v62  ;;  %v862_v22 = vadd.f32 %v3198_v26, %v3079_v46 }
 0x61e   : > { %v865_v46 = vadd.f32 %v3200_v30, %v3081_v49 }
 0x61f   : > { %v1180_v58 = vpack.c.bf16 %v3227_v43, %v3221_v51  ;;  %v1181_v60 = vpack.c.bf16 %v3230_v48, %v3224_v41  ;;  %v2571_v28 = vpack.i.bf16 %v3230_v48, %v3224_v41  ;;  %v2566_v42 = vpack.i.bf16 %v3227_v43, %v3221_v51 }
 0x621   : > { %1225 = vmatpush.bf16.msrb.mxu2 %v1181_v60  ;;  %2572 = vrot.lane.b32.xlu1 %v2571_v28, %s2786_s8 }
 0x622   : > { %2567 = vrot.lane.b32.xlu0 %v2566_v42, %s2786_s8  ;;  %1211 = vmatpush.bf16.msrb.mxu1 %v1180_v58 }
 0x623   : > { %v1065_v23 = vpop.f32.mrf.mxu0 }
 0x624   : > { %v1089_v63 = vpop.f32.mrf.mxu1  ;;  %v1108_v0 = vpop.f32.mrf.mxu2  ;;  %v3251_v5 = vadd.f32 %v1065_v23, %v3123_v18 }
 0x625   : > { %v3246_v1 = vadd.f32 %v1089_v63, %v863_v47  ;;  %v3248_v2 = vadd.f32 %v1108_v0, %v864_v57 }
 0x62b   : > { %v1067_v3 = vpop.f32.mrf.mxu0 }
 0x62c   : > { %v3254_v6 = vadd.f32 %v1067_v3, %v3127_v21  ;;  %v3307_v63 = vpop.f32.mrf.mxu2  ;;  %v3311_v3 = vpop.f32.mrf.mxu1 }
 0x62e   : > { %v1179_v62 = vpack.c.bf16 %v3254_v6, %v3251_v5  ;;  %v2581_v54 = vpack.i.bf16 %v3254_v6, %v3251_v5 }
 0x62f   : > { %v1122_v20 = vpop.f32.mrf.mxu3 }
 0x630   : > { %2582 = vrot.lane.b32.xlu0 %v2581_v54, %s2786_s8  ;;  %1197 = vmatpush.bf16.msrb.mxu0 %v1179_v62  ;;  %v3266_v21 = vadd.f32 %v1122_v20, %v3134_v8 }
 0x633   : > { %v1070_v7 = vpop.f32.mrf.mxu0 }
 0x634   : > { %v3263_v56 = vadd.f32 %v1070_v7, %v862_v22 }
 0x637   : > { %v1124_v18 = vpop.f32.mrf.mxu3 }
 0x638   : > { %v3269_v9 = vadd.f32 %v1124_v18, %v3139_v33 }
 0x63a   : > { %v1182_v10 = vpack.c.bf16 %v3269_v9, %v3266_v21  ;;  %v2576_v11 = vpack.i.bf16 %v3269_v9, %v3266_v21 }
 0x63b   : > { %v3313_v62 = vpop.f32.mrf.mxu0 }
 0x63c   : > { %1239 = vmatpush.bf16.msrb.mxu3 %v1182_v10  ;;  %2577 = vrot.lane.b32.xlu2 %v2576_v11, %s2786_s8 }
 0x63f   : > { %v1127_v26 = vpop.f32.mrf.mxu3 }
 0x640   : > { %v3278_v12 = vadd.f32 %v1127_v26, %v865_v46 }
 0x647   : > { %v3309_v0 = vpop.f32.mrf.mxu3 }
 0x693   : > { %v2573_v8 = vpop.permute.xlu1 %2572 }
 0x694   : > { %v2575_v39 = vunpack.i.h.bf16 %v2573_v8  ;;  %v2574_v14 = vunpack.i.l.bf16 %v2573_v8  ;;  %v2568_v33 = vpop.permute.xlu0 %2567 }
 0x695   : > { %v2570_v13 = vunpack.i.h.bf16 %v2568_v33  ;;  %v2569_v16 = vunpack.i.l.bf16 %v2568_v33 }
 0x696   : > { %v2578_v17 = vpop.permute.xlu2 %2577 }
 0x697   : > { %v2580_v40 = vunpack.i.h.bf16 %v2578_v17  ;;  %v2579_v53 = vunpack.i.l.bf16 %v2578_v17  ;;  %v1169_v61 = vsel %vm264_vm0, %v2569_v16, %v2574_v14  ;;  %v1170_v29 = vsel %vm264_vm0, %v2570_v13, %v2575_v39 }
 0x698   : > { %v1177_v52 = vpack.c.bf16 %v1170_v29, %v1169_v61 }
 0x699   : > { %v1167_v49 = vsel %vm264_vm0, %v2574_v14, %v2579_v53  ;;  %v1168_v30 = vsel %vm264_vm0, %v2575_v39, %v2580_v40 }
 0x69a   : > { %1226 = vmatpush.bf16.msrb.mxu2 %v1177_v52  ;;  %v1178_v35 = vpack.c.bf16 %v1168_v30, %v1167_v49 }
 0x69c   : > { %1240 = vmatpush.bf16.msrb.mxu3 %v1178_v35 }
 0x69d   : > { %2296 = vmatmul.msk.bf16.vlgmr.msrb.gmra.mxu2 %vm286_vm1, %v2406_v34 }
 0x69e   : > { %1340 = vmatpush.bf16.msra.mxu2 %v2951_v31 }
 0x69f   : > { %2297 = vmatmul.msk.bf16.vlgmr.msrb.gmra.mxu3 %vm286_vm1, %v2406_v34 }
 0x6a0   : > { %1359 = vmatpush.bf16.msra.mxu3 %v2951_v31 }
 0x6a2   : > { %v2583_v37 = vpop.permute.xlu0 %2582 }
 0x6a3   : > { %v2585_v55 = vunpack.i.h.bf16 %v2583_v37  ;;  %v2584_v58 = vunpack.i.l.bf16 %v2583_v37  ;;  %v2407_v37 = vld [vmem:[%s3620_s2 + $0x30] sm:$0xff] }
 0x6a5   : > { %v1173_v60 = vsel %vm264_vm0, %v2579_v53, %v2584_v58  ;;  %v1174_v28 = vsel %vm264_vm0, %v2580_v40, %v2585_v55  ;;  %v1171_v42 = vsel %vm264_vm0, %v2584_v58, %v2569_v16  ;;  %v1172_v47 = vsel %vm264_vm0, %v2585_v55, %v2570_v13 }
 0x6a6   : > { %v1175_v57 = vpack.c.bf16 %v1174_v28, %v1173_v60  ;;  %v1176_v23 = vpack.c.bf16 %v1172_v47, %v1171_v42 }
 0x6a8   : > { %1198 = vmatpush.bf16.msrb.mxu0 %v1175_v57  ;;  %1212 = vmatpush.bf16.msrb.mxu1 %v1176_v23 }
 0x6ab   : > { %2294 = vmatmul.msk.bf16.vlgmr.msrb.gmra.mxu0 %vm286_vm1, %v2406_v34  ;;  %2295 = vmatmul.msk.bf16.vlgmr.msrb.gmra.mxu1 %vm286_vm1, %v2406_v34 }
 0x6ac   : > { %1302 = vmatpush.bf16.msra.mxu0 %v2951_v31  ;;  %1321 = vmatpush.bf16.msra.mxu1 %v2951_v31 }
 0x720   : > { %v1228_v54 = vpop.f32.mrf.mxu2 }
 0x721   : > { %2714 = vtanh.f32 %v1228_v54  ;;  %v1249_v11 = vmax.f32 %v1228_v54, 0.0 }
 0x722   : > { %v1242_v20 = vpop.f32.mrf.mxu3 }
 0x723   : > { %2716 = vtanh.f32 %v1242_v20  ;;  %v1250_v26 = vmax.f32 %v1242_v20, 0.0 }
 0x727   : > { %v2715_v46 = vpop.eup %2714 }
 0x728   : > { %v1200_v22 = vpop.f32.mrf.mxu0  ;;  %v1214_v7 = vpop.f32.mrf.mxu1  ;;  %v1265_v33 = vmul.f32 %v2715_v46, %v1249_v11 }
 0x729   : > { %v1230_v18 = vpop.f32.mrf.mxu2  ;;  %v2717_v8 = vpop.eup %2716  ;;  %v1247_v61 = vmax.f32 %v1200_v22, 0.0  ;;  %v1248_v28 = vmax.f32 %v1214_v7, 0.0 }
 0x72a   : > { %v1244_v10 = vpop.f32.mrf.mxu3  ;;  %2718 = vtanh.f32 %v1230_v18  ;;  %v1253_v39 = vmax.f32 %v1230_v18, 0.0  ;;  %v1266_v40 = vmul.f32 %v2717_v8, %v1250_v26 }
 0x72b   : > { %2720 = vtanh.f32 %v1244_v10  ;;  %v1254_v14 = vmax.f32 %v1244_v10, 0.0 }
 0x72c   : > { %2722 = vtanh.f32 %v1200_v22 }
 0x72d   : > { %2724 = vtanh.f32 %v1214_v7  ;;  %v2408_v7 = vld [vmem:[%s3620_s2 + $0x38] sm:$0xff] }
 0x730   : > { %v1202_v13 = vpop.f32.mrf.mxu0  ;;  %v1216_v16 = vpop.f32.mrf.mxu1 }
 0x731   : > { %v2719_v17 = vpop.eup %2718  ;;  %2726 = vtanh.f32 %v1202_v13  ;;  %v1251_v30 = vmax.f32 %v1202_v13, 0.0  ;;  %v1252_v42 = vmax.f32 %v1216_v16, 0.0 }
 0x732   : > { %v2721_v53 = vpop.eup %2720  ;;  %v1269_v29 = vmul.f32 %v2719_v17, %v1253_v39  ;;  %2728 = vtanh.f32 %v1216_v16 }
 0x733   : > { %v2723_v52 = vpop.eup %2722  ;;  %v1270_v49 = vmul.f32 %v2721_v53, %v1254_v14 }
 0x734   : > { %v1273_v34 = vpack.c.bf16 %v1269_v29, %v1265_v33  ;;  %v2725_v55 = vpop.eup %2724  ;;  %v1263_v58 = vmul.f32 %v2723_v52, %v1247_v61 }
 0x735   : > { %v1274_v35 = vpack.c.bf16 %v1270_v49, %v1266_v40  ;;  %v1264_v23 = vmul.f32 %v2725_v55, %v1248_v28 }
 0x736   : > { %1341 = vmatpush.bf16.msra.mxu2 %v1273_v34 }
 0x737   : > { %v2727_v60 = vpop.eup %2726  ;;  %1360 = vmatpush.bf16.msra.mxu3 %v1274_v35 }
 0x738   : > { %v2729_v47 = vpop.eup %2728  ;;  %v1267_v57 = vmul.f32 %v2727_v60, %v1251_v30 }
 0x739   : > { %v1268_v54 = vmul.f32 %v2729_v47, %v1252_v42  ;;  %2314 = vmatmul.msk.bf16.vlgmr.msra.gmra.mxu2 %vm488_vm3, %v2407_v37 }
 0x73a   : > { %2316 = vmatmul.msk.bf16.vlgmr.msra.gmra.mxu3 %vm488_vm3, %v2407_v37  ;;  %v1271_v20 = vpack.c.bf16 %v1267_v57, %v1263_v58 }
 0x73b   : > { %v1272_v22 = vpack.c.bf16 %v1268_v54, %v1264_v23 }
 0x73c   : > { %1303 = vmatpush.bf16.msra.mxu0 %v1271_v20 }
 0x73d   : > { %1322 = vmatpush.bf16.msra.mxu1 %v1272_v22 }
 0x73f   : > { %2310 = vmatmul.msk.bf16.vlgmr.msra.gmra.mxu0 %vm488_vm3, %v2407_v37 }
 0x740   : > { %2312 = vmatmul.msk.bf16.vlgmr.msra.gmra.mxu1 %vm488_vm3, %v2407_v37 }
 0x749   : > { %2315 = vmatmul.msk.bf16.gmra.mxu2 %vm488_vm3, %v2408_v7 }
 0x74a   : > { %2317 = vmatmul.msk.bf16.gmra.mxu3 %vm488_vm3, %v2408_v7 }
 0x74f   : > { %2311 = vmatmul.msk.bf16.gmra.mxu0 %vm488_vm3, %v2408_v7 }
 0x750   : > { %2313 = vmatmul.msk.bf16.gmra.mxu1 %vm488_vm3, %v2408_v7 }
 0x7bc   : > { %v1343_v18 = vpop.f32.mrf.mxu2  ;;  %v1305_v10 = vpop.f32.mrf.mxu0 }
 0x7bd   : > { %v1324_v11 = vpop.f32.mrf.mxu1  ;;  %v1362_v46 = vpop.f32.mrf.mxu3  ;;  %v3330_v26 = vadd.f32 %v1343_v18, %v3224_v41  ;;  %v3376_v42 = vadd.f32 %v1305_v10, %v3251_v5 }
 0x7be   : > { %v3334_v14 = vadd.f32 %v1324_v11, %v3221_v51  ;;  %v3337_v33 = vadd.f32 %v1362_v46, %v3266_v21 }
 0x7bf   : > { %v1397_v51 = vsel %vm1393_vm15, %v3330_v26, 0.0 }
 0x7c0   : > { %v1398_v61 = vsel %vm1394_vm4, %v3337_v33, 0.0 }
 0x7c4   : > { %v1345_v8 = vpop.f32.mrf.mxu2  ;;  %v1307_v39 = vpop.f32.mrf.mxu0 }
 0x7c5   : > { %v3340_v13 = vadd.f32 %v1345_v8, %v3230_v48  ;;  %v1326_v16 = vpop.f32.mrf.mxu1  ;;  %v1364_v17 = vpop.f32.mrf.mxu3  ;;  %v1396_v48 = vsel %vm1392_vm2, %v3334_v14, 0.0  ;;  %v3372_v28 = vadd.f32 %v1307_v39, %v3254_v6 }
 0x7c6   : > { %v3345_v41 = vadd.f32 %v1326_v16, %v3227_v43  ;;  %v3348_v40 = vadd.f32 %v1364_v17, %v3269_v9 }
 0x7c7   : > { %v1401_v21 = vsel %vm1393_vm15, %v3340_v13, 0.0 }
 0x7c8   : > { %v2596_v53 = vpack.i.bf16 %v1401_v21, %v1397_v51  ;;  %v1400_v29 = vsel %vm1392_vm2, %v3345_v41, 0.0  ;;  %v1402_v52 = vsel %vm1394_vm4, %v3348_v40, 0.0 }
 0x7c9   : > { %v2586_v49 = vpack.i.bf16 %v1400_v29, %v1396_v48  ;;  %v2601_v30 = vpack.i.bf16 %v1402_v52, %v1398_v61 }
 0x7ca   : > { %2597 = vrot.lane.b32.xlu2 %v2596_v53, %s2786_s8 }
 0x7cb   : > { %2602 = vrot.lane.b32.xlu0 %v2601_v30, %s2786_s8  ;;  %2587 = vrot.lane.b32.xlu1 %v2586_v49, %s2786_s8 }
 0x7cc   : > { %v1348_v43 = vpop.f32.mrf.mxu2  ;;  %v1310_v9 = vpop.f32.mrf.mxu0 }
 0x7cd   : > { %v3360_v34 = vadd.f32 %v1348_v43, %v3248_v2  ;;  %v3363_v35 = vadd.f32 %v1310_v9, %v3263_v56  ;;  %v1329_v37 = vpop.f32.mrf.mxu1  ;;  %v1367_v55 = vpop.f32.mrf.mxu3  ;;  %v1395_v2 = vsel %vm1391_vm5, %v3376_v42, 0.0 }
 0x7ce   : > { %v3366_v58 = vadd.f32 %v1329_v37, %v3246_v1  ;;  %v3369_v60 = vadd.f32 %v1367_v55, %v3278_v12  ;;  %v1399_v1 = vsel %vm1391_vm5, %v3372_v28, 0.0  ;;  %v2409_v55 = vld [vmem:[%s3619_s1 + $0x28] sm:$0xff] }
 0x7cf   : > { %v2621_v56 = vpack.i.bf16 %v1399_v1, %v1395_v2 }
 0x7d2   : > { %2607 = vrot.lane.b32.xlu2 %v2596_v53, %s2788_s15 }
 0x7d3   : > { %2612 = vrot.lane.b32.xlu0 %v2601_v30, %s2788_s15  ;;  %2592 = vrot.lane.b32.xlu1 %v2586_v49, %s2788_s15 }
 0x7da   : > { %2622 = vrot.lane.b32.xlu2 %v2621_v56, %s2788_s15 }
 0x7db   : > { %2617 = vrot.lane.b32.xlu1 %v2621_v56, %s2786_s8 }
 0x824   : > { %v2598_v6 = vpop.permute.xlu2 %2597 }
 0x825   : > { %v2600_v12 = vunpack.i.h.bf16 %v2598_v6  ;;  %v2599_v47 = vunpack.i.l.bf16 %v2598_v6 }
 0x82c   : > { %v2608_v39 = vpop.permute.xlu2 %2607 }
 0x82d   : > { %v2610_v16 = vunpack.i.h.bf16 %v2608_v39  ;;  %v2609_v17 = vunpack.i.l.bf16 %v2608_v39 }
 0x834   : > { %v2623_v1 = vpop.permute.xlu2 %2622 }
 0x83d   : > { %v2603_v5 = vpop.permute.xlu0 %2602  ;;  %v2588_v57 = vpop.permute.xlu1 %2587 }
 0x83e   : > { %v2605_v23 = vunpack.i.h.bf16 %v2603_v5  ;;  %v2604_v54 = vunpack.i.l.bf16 %v2603_v5  ;;  %v2590_v20 = vunpack.i.h.bf16 %v2588_v57  ;;  %v2589_v22 = vunpack.i.l.bf16 %v2588_v57 }
 0x840   : > { %v1444_v7 = vsel %vm264_vm0, %v2600_v12, %v2605_v23  ;;  %v1443_v18 = vsel %vm264_vm0, %v2599_v47, %v2604_v54  ;;  %v1446_v10 = vsel %vm264_vm0, %v2590_v20, %v2600_v12  ;;  %v1445_v11 = vsel %vm264_vm0, %v2589_v22, %v2599_v47 }
 0x841   : > { %v1458_v46 = vpack.c.bf16 %v1444_v7, %v1443_v18  ;;  %v1457_v8 = vpack.c.bf16 %v1446_v10, %v1445_v11  ;;  %v2625_v12 = vunpack.i.h.bf16 %v2623_v1  ;;  %v2624_v47 = vunpack.i.l.bf16 %v2623_v1 }
 0x843   : > { %1501 = vmatpush.bf16.msrb.mxu2 %v1457_v8  ;;  %1515 = vmatpush.bf16.msrb.mxu3 %v1458_v46 }
 0x845   : > { %v2613_v51 = vpop.permute.xlu0 %2612  ;;  %v2593_v21 = vpop.permute.xlu1 %2592 }
 0x846   : > { %v2615_v53 = vunpack.i.h.bf16 %v2613_v51  ;;  %v2614_v48 = vunpack.i.l.bf16 %v2613_v51  ;;  %v2595_v61 = vunpack.i.h.bf16 %v2593_v21  ;;  %v2594_v29 = vunpack.i.l.bf16 %v2593_v21  ;;  %v3434_v51 = vpop.f32.mrf.mxu1 }
 0x848   : > { %v1421_v52 = vsel %vm624_vm8, %v2594_v29, %v2609_v17  ;;  %v1422_v49 = vsel %vm624_vm8, %v2595_v61, %v2610_v16  ;;  %v1419_v30 = vsel %vm624_vm8, %v2609_v17, %v2614_v48  ;;  %v1420_v43 = vsel %vm624_vm8, %v2610_v16, %v2615_v53  ;;  %v3430_v16 = vpop.f32.mrf.mxu3  ;;  %v3432_v17 = vpop.f32.mrf.mxu0 }
 0x849   : > { %v1453_v9 = vpack.c.bf16 %v1422_v49, %v1421_v52  ;;  %v1454_v37 = vpack.c.bf16 %v1420_v43, %v1419_v30  ;;  %v1425_v46 = vsel %vm624_vm8, %v2614_v48, %v2624_v47  ;;  %v1426_v8 = vsel %vm624_vm8, %v2615_v53, %v2625_v12 }
 0x84b   : > { %1502 = vmatpush.bf16.msrb.mxu2 %v1453_v9  ;;  %1516 = vmatpush.bf16.msrb.mxu3 %v1454_v37 }
 0x84d   : > { %v2618_v2 = vpop.permute.xlu1 %2617 }
 0x84e   : > { %v2620_v56 = vunpack.i.h.bf16 %v2618_v2  ;;  %v2619_v6 = vunpack.i.l.bf16 %v2618_v2  ;;  %2326 = vmatmul.msk.bf16.vlgmr.msrb.gmra.mxu2 %vm286_vm1, %v2409_v55  ;;  %2327 = vmatmul.msk.bf16.vlgmr.msrb.gmra.mxu3 %vm286_vm1, %v2409_v55 }
 0x84f   : > { %1616 = vmatpush.bf16.msra.mxu2 %v2951_v31  ;;  %1635 = vmatpush.bf16.msra.mxu3 %v2951_v31 }
 0x850   : > { %v1448_v5 = vsel %vm264_vm0, %v2620_v56, %v2590_v20  ;;  %v1450_v57 = vsel %vm264_vm0, %v2605_v23, %v2620_v56  ;;  %v1447_v7 = vsel %vm264_vm0, %v2619_v6, %v2589_v22  ;;  %v1449_v18 = vsel %vm264_vm0, %v2604_v54, %v2619_v6  ;;  %v3428_v54 = vpop.f32.mrf.mxu2 }
 0x851   : > { %v1455_v10 = vpack.c.bf16 %v1450_v57, %v1449_v18  ;;  %v1456_v11 = vpack.c.bf16 %v1448_v5, %v1447_v7  ;;  %v1423_v20 = vsel %vm624_vm8, %v2624_v47, %v2594_v29  ;;  %v1424_v23 = vsel %vm624_vm8, %v2625_v12, %v2595_v61 }
 0x852   : > { %v1451_v22 = vpack.c.bf16 %v1426_v8, %v1425_v46  ;;  %v1452_v39 = vpack.c.bf16 %v1424_v23, %v1423_v20  ;;  %v2410_v8 = vld [vmem:[%s3620_s2 + $0x40] sm:$0xff]  ;;  %vm1668_vm0 = vcmp.ge.s32.totalorder %v2972_v19, 11  ;;  %vm1667_vm8 = vcmp.ge.s32.totalorder %v2991_v32, 11 }
 0x853   : > { %1473 = vmatpush.bf16.msrb.mxu0 %v1455_v10  ;;  %1487 = vmatpush.bf16.msrb.mxu1 %v1456_v11 }
 0x857   : > { %1474 = vmatpush.bf16.msrb.mxu0 %v1451_v22  ;;  %1488 = vmatpush.bf16.msrb.mxu1 %v1452_v39 }
 0x85a   : > { %2324 = vmatmul.msk.bf16.vlgmr.msrb.gmra.mxu0 %vm286_vm1, %v2409_v55  ;;  %2325 = vmatmul.msk.bf16.vlgmr.msrb.gmra.mxu1 %vm286_vm1, %v2409_v55 }
 0x85b   : > { %1578 = vmatpush.bf16.msra.mxu0 %v2951_v31  ;;  %1597 = vmatpush.bf16.msra.mxu1 %v2951_v31 }
 0x8d1   : > { %v1504_v21 = vpop.f32.mrf.mxu2  ;;  %v1518_v53 = vpop.f32.mrf.mxu3 }
 0x8d2   : > { %2730 = vtanh.f32 %v1518_v53  ;;  %v1526_v49 = vmax.f32 %v1518_v53, 0.0  ;;  %v1525_v37 = vmax.f32 %v1504_v21, 0.0 }
 0x8d3   : > { %2732 = vtanh.f32 %v1504_v21 }
 0x8d7   : > { %v1476_v48 = vpop.f32.mrf.mxu0  ;;  %v1490_v61 = vpop.f32.mrf.mxu1 }
 0x8d8   : > { %v2731_v30 = vpop.eup %2730  ;;  %v1523_v5 = vmax.f32 %v1476_v48, 0.0  ;;  %v1524_v39 = vmax.f32 %v1490_v61, 0.0 }
 0x8d9   : > { %v1506_v29 = vpop.f32.mrf.mxu2  ;;  %v1520_v52 = vpop.f32.mrf.mxu3  ;;  %v1542_v6 = vmul.f32 %v2731_v30, %v1526_v49 }
 0x8da   : > { %2734 = vtanh.f32 %v1506_v29  ;;  %v2733_v43 = vpop.eup %2732  ;;  %v1530_v9 = vmax.f32 %v1520_v52, 0.0  ;;  %v1529_v55 = vmax.f32 %v1506_v29, 0.0 }
 0x8db   : > { %2736 = vtanh.f32 %v1520_v52  ;;  %v1541_v47 = vmul.f32 %v2733_v43, %v1525_v37 }
 0x8dc   : > { %2738 = vtanh.f32 %v1476_v48 }
 0x8dd   : > { %2740 = vtanh.f32 %v1490_v61  ;;  %v2411_v61 = vld [vmem:[%s3620_s2 + $0x48] sm:$0xff] }
 0x8df   : > { %v1478_v1 = vpop.f32.mrf.mxu0  ;;  %v1492_v2 = vpop.f32.mrf.mxu1 }
 0x8e0   : > { %v2735_v56 = vpop.eup %2734  ;;  %2742 = vtanh.f32 %v1478_v1  ;;  %v1527_v10 = vmax.f32 %v1478_v1, 0.0  ;;  %v1528_v21 = vmax.f32 %v1492_v2, 0.0 }
 0x8e1   : > { %v2737_v12 = vpop.eup %2736  ;;  %v1545_v57 = vmul.f32 %v2735_v56, %v1529_v55  ;;  %2744 = vtanh.f32 %v1492_v2 }
 0x8e2   : > { %v2739_v7 = vpop.eup %2738  ;;  %v1546_v18 = vmul.f32 %v2737_v12, %v1530_v9 }
 0x8e3   : > { %v1549_v11 = vpack.c.bf16 %v1545_v57, %v1541_v47  ;;  %v2741_v20 = vpop.eup %2740  ;;  %v1539_v23 = vmul.f32 %v2739_v7, %v1523_v5 }
 0x8e4   : > { %v1550_v46 = vpack.c.bf16 %v1546_v18, %v1542_v6  ;;  %v1540_v29 = vmul.f32 %v2741_v20, %v1524_v39 }
 0x8e5   : > { %1617 = vmatpush.bf16.msra.mxu2 %v1549_v11 }
 0x8e6   : > { %v2743_v22 = vpop.eup %2742  ;;  %1636 = vmatpush.bf16.msra.mxu3 %v1550_v46 }
 0x8e7   : > { %v2745_v53 = vpop.eup %2744  ;;  %v1543_v48 = vmul.f32 %v2743_v22, %v1527_v10 }
 0x8e8   : > { %v1544_v52 = vmul.f32 %v2745_v53, %v1528_v21  ;;  %2344 = vmatmul.msk.bf16.vlgmr.msra.gmra.mxu2 %vm488_vm3, %v2410_v8 }
 0x8e9   : > { %2346 = vmatmul.msk.bf16.vlgmr.msra.gmra.mxu3 %vm488_vm3, %v2410_v8  ;;  %v1547_v49 = vpack.c.bf16 %v1543_v48, %v1539_v23 }
 0x8ea   : > { %v1548_v30 = vpack.c.bf16 %v1544_v52, %v1540_v29 }
 0x8eb   : > { %1579 = vmatpush.bf16.msra.mxu0 %v1547_v49 }
 0x8ec   : > { %1598 = vmatpush.bf16.msra.mxu1 %v1548_v30 }
 0x8ee   : > { %2340 = vmatmul.msk.bf16.vlgmr.msra.gmra.mxu0 %vm488_vm3, %v2410_v8 }
 0x8ef   : > { %2342 = vmatmul.msk.bf16.vlgmr.msra.gmra.mxu1 %vm488_vm3, %v2410_v8 }
 0x8f8   : > { %2345 = vmatmul.msk.bf16.gmra.mxu2 %vm488_vm3, %v2411_v61 }
 0x8f9   : > { %2347 = vmatmul.msk.bf16.gmra.mxu3 %vm488_vm3, %v2411_v61 }
 0x8fe   : > { %2341 = vmatmul.msk.bf16.gmra.mxu0 %vm488_vm3, %v2411_v61 }
 0x8ff   : > { %2343 = vmatmul.msk.bf16.gmra.mxu1 %vm488_vm3, %v2411_v61 }
 0x96b   : > { %v1581_v43 = vpop.f32.mrf.mxu0  ;;  %v1619_v9 = vpop.f32.mrf.mxu2 }
 0x96c   : > { %v1600_v37 = vpop.f32.mrf.mxu1  ;;  %v1638_v55 = vpop.f32.mrf.mxu3  ;;  %v1650_v2 = vadd.f32 %v1619_v9, %v3330_v26 }
 0x96d   : > { %v1649_v1 = vadd.f32 %v1600_v37, %v3334_v14  ;;  %v1651_v12 = vadd.f32 %v1638_v55, %v3337_v33 }
 0x96e   : > { %v1673_v10 = vsel %vm1669_vm6, %v1650_v2, 0.0 }
 0x96f   : > { %v1672_v26 = vsel %vm1668_vm0, %v1649_v1, 0.0  ;;  %v1674_v46 = vsel %vm1670_vm7, %v1651_v12, 0.0 }
 0x973   : > { %v1583_v56 = vpop.f32.mrf.mxu0  ;;  %v1621_v6 = vpop.f32.mrf.mxu2 }
 0x974   : > { %v1602_v47 = vpop.f32.mrf.mxu1  ;;  %v1654_v5 = vadd.f32 %v1621_v6, %v3340_v13  ;;  %v1640_v57 = vpop.f32.mrf.mxu3  ;;  %v1652_v21 = vadd.f32 %v1583_v56, %v3372_v28 }
 0x975   : > { %v1653_v7 = vadd.f32 %v1602_v47, %v3345_v41  ;;  %v1655_v14 = vadd.f32 %v1640_v57, %v3348_v40 }
 0x976   : > { %v1677_v18 = vsel %vm1669_vm6, %v1654_v5, 0.0 }
 0x977   : > { %v1676_v11 = vsel %vm1668_vm0, %v1653_v7, 0.0  ;;  %v2636_v8 = vpack.i.bf16 %v1677_v18, %v1673_v10  ;;  %v1678_v15 = vsel %vm1670_vm7, %v1655_v14, 0.0 }
 0x978   : > { %v2626_v19 = vpack.i.bf16 %v1676_v11, %v1672_v26  ;;  %v2641_v20 = vpack.i.bf16 %v1678_v15, %v1674_v46 }
 0x979   : > { %2637 = vrot.lane.b32.xlu1 %v2636_v8, %s2789_s30 }
 0x97a   : > { %2627 = vrot.lane.b32.xlu0 %v2626_v19, %s2789_s30  ;;  %2642 = vrot.lane.b32.xlu2 %v2641_v20, %s2789_s30 }
 0x97b   : > { %v1586_v38 = vpop.f32.mrf.mxu0  ;;  %v1624_v33 = vpop.f32.mrf.mxu2 }
 0x97c   : > { %v3463_v13 = vadd.f32 %v1586_v38, %v3363_v35  ;;  %v1605_v41 = vpop.f32.mrf.mxu1  ;;  %v3466_v40 = vadd.f32 %v1624_v33, %v3360_v34  ;;  %v1643_v23 = vpop.f32.mrf.mxu3  ;;  %v1648_v35 = vadd.f32 %v1581_v43, %v3376_v42  ;;  %v1675_v34 = vsel %vm1667_vm8, %v1652_v21, 0.0 }
 0x97d   : > { %v3469_v22 = vadd.f32 %v1605_v41, %v3366_v58  ;;  %v3472_v39 = vadd.f32 %v1643_v23, %v3369_v60 }
 0x97e   : > { %v1671_v53 = vsel %vm1667_vm8, %v1648_v35, 0.0 }
 0x97f   : > { %v2661_v48 = vpack.i.bf16 %v1675_v34, %v1671_v53 }
 0x981   : > { %2647 = vrot.lane.b32.xlu1 %v2636_v8, %s2790_s5  ;;  %v2412_v8 = vld [vmem:[%s3619_s1 + $0x30] sm:$0xff] }
 0x982   : > { %2632 = vrot.lane.b32.xlu0 %v2626_v19, %s2790_s5  ;;  %2652 = vrot.lane.b32.xlu2 %v2641_v20, %s2790_s5 }
 0x983   : > { %v3529_v27 = vpop.f32.mrf.mxu0 }
 0x989   : > { %2662 = vrot.lane.b32.xlu1 %v2661_v48, %s2790_s5 }
 0x98a   : > { %2657 = vrot.lane.b32.xlu0 %v2661_v48, %s2789_s30 }
 0x9d4   : > { %v2643_v58 = vpop.permute.xlu2 %2642 }
 0x9d5   : > { %v2645_v60 = vunpack.i.h.bf16 %v2643_v58  ;;  %v2644_v28 = vunpack.i.l.bf16 %v2643_v58 }
 0x9dc   : > { %v2653_v2 = vpop.permute.xlu2 %2652 }
 0x9dd   : > { %v2655_v56 = vunpack.i.h.bf16 %v2653_v2  ;;  %v2654_v6 = vunpack.i.l.bf16 %v2653_v2 }
 0x9eb   : > { %v2638_v29 = vpop.permute.xlu1 %2637 }
 0x9ec   : > { %v2628_v52 = vpop.permute.xlu0 %2627  ;;  %v2640_v49 = vunpack.i.h.bf16 %v2638_v29  ;;  %v2639_v30 = vunpack.i.l.bf16 %v2638_v29 }
 0x9ed   : > { %v2630_v61 = vunpack.i.h.bf16 %v2628_v52  ;;  %v2629_v42 = vunpack.i.l.bf16 %v2628_v52 }
 0x9ee   : > { %v1720_v43 = vsel %vm926_vm13, %v2640_v49, %v2645_v60  ;;  %v1719_v32 = vsel %vm926_vm13, %v2639_v30, %v2644_v28 }
 0x9ef   : > { %v1722_v9 = vsel %vm926_vm13, %v2630_v61, %v2640_v49  ;;  %v1721_v37 = vsel %vm926_vm13, %v2629_v42, %v2639_v30  ;;  %v1734_v55 = vpack.c.bf16 %v1720_v43, %v1719_v32  ;;  %v3531_v43 = vpop.f32.mrf.mxu1 }
 0x9f0   : > { %v1733_v1 = vpack.c.bf16 %v1722_v9, %v1721_v37 }
 0x9f1   : > { %1791 = vmatpush.bf16.msrb.mxu3 %v1734_v55 }
 0x9f2   : > { %1777 = vmatpush.bf16.msrb.mxu2 %v1733_v1 }
 0x9f3   : > { %v2648_v12 = vpop.permute.xlu1 %2647 }
 0x9f4   : > { %v2633_v47 = vpop.permute.xlu0 %2632  ;;  %v2650_v5 = vunpack.i.h.bf16 %v2648_v12  ;;  %v2649_v57 = vunpack.i.l.bf16 %v2648_v12 }
 0x9f5   : > { %v2635_v7 = vunpack.i.h.bf16 %v2633_v47  ;;  %v2634_v14 = vunpack.i.l.bf16 %v2633_v47 }
 0x9f6   : > { %v1695_v10 = vsel %vm901_vm14, %v2649_v57, %v2654_v6  ;;  %v1696_v11 = vsel %vm901_vm14, %v2650_v5, %v2655_v56 }
 0x9f7   : > { %v1697_v18 = vsel %vm901_vm14, %v2634_v14, %v2649_v57  ;;  %v1698_v26 = vsel %vm901_vm14, %v2635_v7, %v2650_v5  ;;  %v1730_v19 = vpack.c.bf16 %v1696_v11, %v1695_v10 }
 0x9f8   : > { %v1729_v46 = vpack.c.bf16 %v1698_v26, %v1697_v18 }
 0x9f9   : > { %1792 = vmatpush.bf16.msrb.mxu3 %v1730_v19 }
 0x9fa   : > { %1778 = vmatpush.bf16.msrb.mxu2 %v1729_v46 }
 0x9fb   : > { %v2663_v15 = vpop.permute.xlu1 %2662 }
 0x9fc   : > { %v2658_v20 = vpop.permute.xlu0 %2657  ;;  %v2665_v38 = vunpack.i.h.bf16 %v2663_v15  ;;  %v2664_v33 = vunpack.i.l.bf16 %v2663_v15  ;;  %2357 = vmatmul.msk.bf16.vlgmr.msrb.gmra.mxu3 %vm286_vm1, %v2412_v8 }
 0x9fd   : > { %1905 = vmatpush.bf16.msra.mxu3 %v2951_v31  ;;  %v2660_v41 = vunpack.i.h.bf16 %v2658_v20  ;;  %v2659_v23 = vunpack.i.l.bf16 %v2658_v20  ;;  %2356 = vmatmul.msk.bf16.vlgmr.msrb.gmra.mxu2 %vm286_vm1, %v2412_v8 }
 0x9fe   : > { %1888 = vmatpush.bf16.msra.mxu2 %v2951_v31  ;;  %v1701_v29 = vsel %vm901_vm14, %v2654_v6, %v2664_v33  ;;  %v1702_v52 = vsel %vm901_vm14, %v2655_v56, %v2665_v38  ;;  %v1699_v49 = vsel %vm901_vm14, %v2664_v33, %v2634_v14 }
 0x9ff   : > { %v1724_v21 = vsel %vm926_vm13, %v2660_v41, %v2630_v61  ;;  %v1726_v35 = vsel %vm926_vm13, %v2645_v60, %v2660_v41  ;;  %v1723_v34 = vsel %vm926_vm13, %v2659_v23, %v2629_v42  ;;  %v1725_v53 = vsel %vm926_vm13, %v2644_v28, %v2659_v23  ;;  %v3525_v28 = vpop.f32.mrf.mxu2  ;;  %v3527_v42 = vpop.f32.mrf.mxu3 }
 0xa00   : > { %v1731_v48 = vpack.c.bf16 %v1726_v35, %v1725_v53  ;;  %v1732_v58 = vpack.c.bf16 %v1724_v21, %v1723_v34  ;;  %v1700_v60 = vsel %vm901_vm14, %v2665_v38, %v2635_v7  ;;  %v1727_v30 = vpack.c.bf16 %v1702_v52, %v1701_v29  ;;  %v2413_v21 = vld [vmem:[%s3620_s2 + $0x50] sm:$0xff] }
 0xa01   : > { %v1728_v61 = vpack.c.bf16 %v1700_v60, %v1699_v49  ;;  %v2414_v60 = vld [vmem:[%s3620_s2 + $0x58] sm:$0xff] }
 0xa02   : > { %1749 = vmatpush.bf16.msrb.mxu0 %v1731_v48  ;;  %1763 = vmatpush.bf16.msrb.mxu1 %v1732_v58 }
 0xa06   : > { %1750 = vmatpush.bf16.msrb.mxu0 %v1727_v30  ;;  %1764 = vmatpush.bf16.msrb.mxu1 %v1728_v61 }
 0xa09   : > { %2354 = vmatmul.msk.bf16.vlgmr.msrb.gmra.mxu0 %vm286_vm1, %v2412_v8  ;;  %2355 = vmatmul.msk.bf16.vlgmr.msrb.gmra.mxu1 %vm286_vm1, %v2412_v8  ;;  %vm1951_vm1 = vcmask 130048  }
 0xa0a   : > { %1854 = vmatpush.bf16.msra.mxu0 %v2951_v31  ;;  %1871 = vmatpush.bf16.msra.mxu1 %v2951_v31 }
 0xa7f   : > { %v1794_v9 = vpop.f32.mrf.mxu3 }
 0xa80   : > { %v1780_v32 = vpop.f32.mrf.mxu2  ;;  %v1802_v7 = vmax.f32 %v1794_v9, 0.0 }
 0xa81   : > { %2746 = vtanh.f32 %v1780_v32  ;;  %v1801_v6 = vmax.f32 %v1780_v32, 0.0 }
 0xa82   : > { %2748 = vtanh.f32 %v1794_v9 }
 0xa86   : > { %v1752_v37 = vpop.f32.mrf.mxu0  ;;  %v1766_v55 = vpop.f32.mrf.mxu1 }
 0xa87   : > { %v1796_v31 = vpop.f32.mrf.mxu3  ;;  %v2747_v2 = vpop.eup %2746  ;;  %v1799_v10 = vmax.f32 %v1752_v37, 0.0  ;;  %v1800_v8 = vmax.f32 %v1766_v55, 0.0 }
 0xa88   : > { %v1782_v1 = vpop.f32.mrf.mxu2  ;;  %v2749_v56 = vpop.eup %2748  ;;  %v1806_v14 = vmax.f32 %v1796_v31, 0.0  ;;  %v1817_v26 = vmul.f32 %v2747_v2, %v1801_v6  ;;  %v868_v6 = vadd.f32 %v3194_v24, %v3075_v44 }
 0xa89   : > { %2750 = vtanh.f32 %v1782_v1  ;;  %v1805_v12 = vmax.f32 %v1782_v1, 0.0  ;;  %v1818_v19 = vmul.f32 %v2749_v56, %v1802_v7  ;;  %v869_v7 = vadd.f32 %v3204_v59, %v3085_v4 }
 0xa8a   : > { %2752 = vtanh.f32 %v1796_v31 }
 0xa8b   : > { %2754 = vtanh.f32 %v1752_v37 }
 0xa8c   : > { %2756 = vtanh.f32 %v1766_v55 }
 0xa8e   : > { %v1754_v47 = vpop.f32.mrf.mxu0  ;;  %v1768_v5 = vpop.f32.mrf.mxu1 }
 0xa8f   : > { %v2751_v57 = vpop.eup %2750  ;;  %2758 = vtanh.f32 %v1754_v47  ;;  %v1803_v38 = vmax.f32 %v1754_v47, 0.0  ;;  %v1804_v41 = vmax.f32 %v1768_v5, 0.0 }
 0xa90   : > { %v2753_v18 = vpop.eup %2752  ;;  %v1821_v11 = vmul.f32 %v2751_v57, %v1805_v12  ;;  %2760 = vtanh.f32 %v1768_v5  ;;  %v866_v12 = vadd.f32 %v3202_v36, %v3083_v50  ;;  %v867_v57 = vadd.f32 %v3196_v25, %v3077_v45 }
 0xa91   : > { %v2755_v46 = vpop.eup %2754  ;;  %v1822_v15 = vmul.f32 %v2753_v18, %v1806_v14  ;;  %v1146_v14 = vadd.f32 %v3307_v63, %v868_v6 }
 0xa92   : > { %v2757_v20 = vpop.eup %2756  ;;  %v1825_v33 = vpack.c.bf16 %v1821_v11, %v1817_v26  ;;  %v1815_v35 = vmul.f32 %v2755_v46, %v1799_v10  ;;  %v1144_v18 = vadd.f32 %v3313_v62, %v866_v12  ;;  %v1145_v26 = vadd.f32 %v3311_v3, %v867_v57 }
 0xa93   : > { %v1826_v23 = vpack.c.bf16 %v1822_v15, %v1818_v19  ;;  %v1816_v53 = vmul.f32 %v2757_v20, %v1800_v8  ;;  %v1147_v10 = vadd.f32 %v3309_v0, %v869_v7  ;;  %v1386_v44 = vadd.f32 %v3428_v54, %v1146_v14 }
 0xa94   : > { %1889 = vmatpush.bf16.msra.mxu2 %v1825_v33  ;;  %v1384_v50 = vadd.f32 %v3432_v17, %v1144_v18  ;;  %v1385_v45 = vadd.f32 %v3434_v51, %v1145_v26 }
 0xa95   : > { %v2759_v34 = vpop.eup %2758  ;;  %1906 = vmatpush.bf16.msra.mxu3 %v1826_v23  ;;  %v1387_v4 = vadd.f32 %v3430_v16, %v1147_v10  ;;  %v1662_v0 = vadd.f32 %v3525_v28, %v1386_v44 }
 0xa96   : > { %v2761_v48 = vpop.eup %2760  ;;  %v1819_v58 = vmul.f32 %v2759_v34, %v1803_v38  ;;  %v1660_v63 = vadd.f32 %v3529_v27, %v1384_v50  ;;  %v1661_v3 = vadd.f32 %v3531_v43, %v1385_v45 }
 0xa97   : > { %v1820_v29 = vmul.f32 %v2761_v48, %v1804_v41  ;;  %2374 = vmatmul.msk.bf16.vlgmr.msra.gmra.mxu2 %vm488_vm3, %v2413_v21  ;;  %v1663_v62 = vadd.f32 %v3527_v42, %v1387_v4 }
 0xa98   : > { %2376 = vmatmul.msk.bf16.vlgmr.msra.gmra.mxu3 %vm488_vm3, %v2413_v21  ;;  %v1823_v52 = vpack.c.bf16 %v1819_v58, %v1815_v35 }
 0xa99   : > { %v1824_v49 = vpack.c.bf16 %v1820_v29, %v1816_v53  ;;  %v2415_v29 = vld [vmem:[%s3621_s3] sm:$0xff] }
 0xa9a   : > { %1855 = vmatpush.bf16.msra.mxu0 %v1823_v52 }
 0xa9b   : > { %1872 = vmatpush.bf16.msra.mxu1 %v1824_v49 }
 0xa9d   : > { %2370 = vmatmul.msk.bf16.vlgmr.msra.gmra.mxu0 %vm488_vm3, %v2413_v21 }
 0xa9e   : > { %2372 = vmatmul.msk.bf16.vlgmr.msra.gmra.mxu1 %vm488_vm3, %v2413_v21 }
 0xaa7   : > { %2375 = vmatmul.msk.bf16.gmra.mxu2 %vm488_vm3, %v2414_v60 }
 0xaa8   : > { %2377 = vmatmul.msk.bf16.gmra.mxu3 %vm488_vm3, %v2414_v60 }
 0xaad   : > { %2371 = vmatmul.msk.bf16.gmra.mxu0 %vm488_vm3, %v2414_v60 }
 0xaae   : > { %2373 = vmatmul.msk.bf16.gmra.mxu1 %vm488_vm3, %v2414_v60 }
 0xb1a   : > { %v1857_v30 = vpop.f32.mrf.mxu0  ;;  %v1891_v61 = vpop.f32.mrf.mxu2 }
 0xb1b   : > { %v1874_v32 = vpop.f32.mrf.mxu1  ;;  %v1908_v9 = vpop.f32.mrf.mxu3 }
 0xb22   : > { %v1858_v37 = vpop.f32.mrf.mxu0  ;;  %v1892_v55 = vpop.f32.mrf.mxu2 }
 0xb23   : > { %v1875_v1 = vpop.f32.mrf.mxu1  ;;  %v1909_v31 = vpop.f32.mrf.mxu3 }
 0xb2a   : > { %v1860_v2 = vpop.f32.mrf.mxu0  ;;  %v1894_v56 = vpop.f32.mrf.mxu2 }
 0xb2b   : > { %v1877_v47 = vpop.f32.mrf.mxu1  ;;  %v1911_v5 = vpop.f32.mrf.mxu3  ;;  %v1916_v24 = vadd.f32 %v1860_v2, %v3463_v13  ;;  %v1918_v36 = vadd.f32 %v1894_v56, %v3466_v40 }
 0xb2c   : > { %v1917_v25 = vadd.f32 %v1877_v47, %v3469_v22  ;;  %v1919_v59 = vadd.f32 %v1911_v5, %v3472_v39 }
 0xb2d   : > { %v1924_v13 = vmul.f32 0.16666667, %v1916_v24  ;;  %v1926_v40 = vmul.f32 0.16666667, %v1918_v36 }
 0xb2e   : > { %v1925_v19 = vmul.f32 0.16666667, %v1917_v25  ;;  %v1927_v22 = vmul.f32 0.16666667, %v1919_v59 }
 0xb2f   : > { %v1934_v38 = vmax.f32 %v1924_v13, 0.0  ;;  %v1936_v43 = vmax.f32 %v1926_v40, 0.0 }
 0xb30   : > { %v1935_v41 = vmax.f32 %v1925_v19, 0.0  ;;  %v1937_v23 = vmax.f32 %v1927_v22, 0.0 }
 0xb32   : > { %v1862_v54 = vpop.f32.mrf.mxu0  ;;  %v1896_v17 = vpop.f32.mrf.mxu2 }
 0xb33   : > { %v1920_v11 = vadd.f32 %v1862_v54, %v1660_v63  ;;  %v1879_v51 = vpop.f32.mrf.mxu1  ;;  %v1922_v46 = vadd.f32 %v1896_v17, %v1662_v0  ;;  %v1913_v16 = vpop.f32.mrf.mxu3 }
 0xb34   : > { %v1921_v8 = vadd.f32 %v1879_v51, %v1661_v3  ;;  %v1923_v39 = vadd.f32 %v1913_v16, %v1663_v62 }
 0xb35   : > { %v1928_v15 = vmul.f32 0.16666667, %v1920_v11  ;;  %v1930_v27 = vmul.f32 0.16666667, %v1922_v46 }
 0xb36   : > { %v1929_v20 = vmul.f32 0.16666667, %v1921_v8  ;;  %v1931_v28 = vmul.f32 0.16666667, %v1923_v39 }
 0xb37   : > { %v1938_v33 = vmax.f32 %v1928_v15, 0.0  ;;  %v1940_v42 = vmax.f32 %v1930_v27, 0.0 }
 0xb38   : > { %v1939_v21 = vmax.f32 %v1929_v20, 0.0  ;;  %v1941_v35 = vmax.f32 %v1931_v28, 0.0 }
 0xb39   : > { %v1942_v34 = vpack.c.bf16 %v1938_v33, %v1934_v38  ;;  %v1944_v53 = vpack.c.bf16 %v1940_v42, %v1936_v43 }
 0xb3a   : > { %v1943_v48 = vpack.c.bf16 %v1939_v21, %v1935_v41  ;;  %v1945_v58 = vpack.c.bf16 %v1941_v35, %v1937_v23 }
 0xb3b   : > { %1962 = vmatpush.bf16.msrb.mxu0 %v1942_v34  ;;  %1990 = vmatpush.bf16.msrb.mxu2 %v1944_v53 }
 0xb3c   : > { %1976 = vmatpush.bf16.msrb.mxu1 %v1943_v48  ;;  %2004 = vmatpush.bf16.msrb.mxu3 %v1945_v58 }
 0xb3e   : > { %2384 = vmatmul.msk.bf16.vlgmr.msrb.gmra.mxu2 %vm1951_vm1, %v2415_v29  ;;  %2382 = vmatmul.msk.bf16.vlgmr.msrb.gmra.mxu0 %vm1951_vm1, %v2415_v29 }
 0xb3f   : > { %2385 = vmatmul.msk.bf16.vlgmr.msrb.gmra.mxu3 %vm1951_vm1, %v2415_v29  ;;  %2383 = vmatmul.msk.bf16.vlgmr.msrb.gmra.mxu1 %vm1951_vm1, %v2415_v29 }
 0xbbb   : > { %v1964_v52 = vpop.f32.mrf.mxu0 }
 0xbbc   : > { %v1978_v49 = vpop.f32.mrf.mxu1  ;;  %v2011_v61 = vmax.f32 %v1964_v52, 0.0 }
 0xbbd   : > { %v2012_v32 = vmax.f32 %v1978_v49, 0.0 }
 0xbc1   : > { %v1992_v60 = vpop.f32.mrf.mxu2 }
 0xbc2   : > { %v2006_v30 = vpop.f32.mrf.mxu3  ;;  %v2013_v6 = vmax.f32 %v1992_v60, 0.0 }
 0xbc3   : > { %v1966_v9 = vpop.f32.mrf.mxu0  ;;  %v2014_v5 = vmax.f32 %v2006_v30, 0.0 }
 0xbc4   : > { %v2015_v37 = vmax.f32 %v1966_v9, 0.0  ;;  %v1980_v55 = vpop.f32.mrf.mxu1 }
 0xbc5   : > { %v2016_v1 = vmax.f32 %v1980_v55, 0.0 }
 0xbc6   : > { %v2019_v31 = vpack.c.bf16 %v2015_v37, %v2011_v61 }
 0xbc7   : > { %v2020_v2 = vpack.c.bf16 %v2016_v1, %v2012_v32 }
 0xbc8   : > { %2030 = vmatpush.bf16.msra.mxu0 %v2019_v31 }
 0xbc9   : > { %v1994_v56 = vpop.f32.mrf.mxu2  ;;  %2044 = vmatpush.bf16.msra.mxu1 %v2020_v2 }
 0xbca   : > { %v2017_v12 = vmax.f32 %v1994_v56, 0.0  ;;  %v2008_v47 = vpop.f32.mrf.mxu3 }
 0xbcb   : > { %v2018_v57 = vmax.f32 %v2008_v47, 0.0  ;;  %2386 = vmatmul.msk.bf16.vlgmr.msra.gmra.mxu0 %vm1951_vm1, %v2415_v29 }
 0xbcc   : > { %v2021_v7 = vpack.c.bf16 %v2017_v12, %v2013_v6  ;;  %2387 = vmatmul.msk.bf16.vlgmr.msra.gmra.mxu1 %vm1951_vm1, %v2415_v29 }
 0xbcd   : > { %v2022_v14 = vpack.c.bf16 %v2018_v57, %v2014_v5 }
 0xbce   : > { %2058 = vmatpush.bf16.msra.mxu2 %v2021_v7 }
 0xbcf   : > { %2072 = vmatpush.bf16.msra.mxu3 %v2022_v14 }
 0xbd1   : > { %2388 = vmatmul.msk.bf16.vlgmr.msra.gmra.mxu2 %vm1951_vm1, %v2415_v29 }
 0xbd2   : > { %2389 = vmatmul.msk.bf16.vlgmr.msra.gmra.mxu3 %vm1951_vm1, %v2415_v29 }
 0xc48   : > { %v2032_v18 = vpop.f32.mrf.mxu0 }
 0xc49   : > { %2079 = vst [vmem:[%s3583_s20] sm:$0xff] %v2032_v18  ;;  %v2046_v26 = vpop.f32.mrf.mxu1 }
 0xc4a   : > { %2080 = vst [vmem:[%s3583_s20 + $0x8] sm:$0xff] %v2046_v26 }
 0xc50   : > { %v2034_v10 = vpop.f32.mrf.mxu0  ;;  %v2109_v4 = vld [vmem:[%s3583_s20] sm:$0xff] (%p2846_p5) }
 0xc51   : > { %2083 = vst [vmem:[%s3583_s20 + $0x20] sm:$0xff] %v2034_v10  ;;  %v2048_v44 = vpop.f32.mrf.mxu1  ;;  %v2111_v25 = vld [vmem:[%s3583_s20 + $0x8] sm:$0xff] (%p2846_p5) }
 0xc52   : > { %2084 = vst [vmem:[%s3583_s20 + $0x28] sm:$0xff] %v2048_v44 }
 0xc53   : > { %2110 = vst [vmem:[%s2096_s25] sm:$0xff] (%p2846_p5), %v2109_v4 }
 0xc54   : > { %v2060_v50 = vpop.f32.mrf.mxu2  ;;  %2112 = vst [vmem:[%s2096_s25 + $0x8] sm:$0xff] (%p2846_p5), %v2111_v25 }
 0xc55   : > { %2081 = vst [vmem:[%s3583_s20 + $0x10] sm:$0xff] %v2060_v50  ;;  %v2074_v24 = vpop.f32.mrf.mxu3 }
 0xc56   : > { %2082 = vst [vmem:[%s3583_s20 + $0x18] sm:$0xff] %v2074_v24 }
 0xc58   : > { %v2117_v0 = vld [vmem:[%s3583_s20 + $0x20] sm:$0xff] (%p2846_p5) }
 0xc59   : > { %v2119_v3 = vld [vmem:[%s3583_s20 + $0x28] sm:$0xff] (%p2846_p5)  ;;  %2118 = vst [vmem:[%s2096_s25 + $0x40] sm:$0xff] (%p2846_p5), %v2117_v0 }
 0xc5a   : > { %2093 = sbr.rel (!%p2846_p5) target bundleno = 3175 (0xc67), region = 63  ;;  %2120 = vst [vmem:[%s2096_s25 + $0x48] sm:$0xff] (%p2846_p5), %v2119_v3 }
 0xc5c   : > { %v2062_v36 = vpop.f32.mrf.mxu2  ;;  %v2113_v59 = vld [vmem:[%s3583_s20 + $0x10] sm:$0xff] (%p2846_p5) }
 0xc5d   : > { %2085 = vst [vmem:[%s3583_s20 + $0x30] sm:$0xff] %v2062_v36  ;;  %v2076_v45 = vpop.f32.mrf.mxu3  ;;  %v2115_v63 = vld [vmem:[%s3583_s20 + $0x18] sm:$0xff] (%p2846_p5) }
 0xc5e   : > { %2086 = vst [vmem:[%s3583_s20 + $0x38] sm:$0xff] %v2076_v45 }
 0xc5f   : > { %2114 = vst [vmem:[%s2096_s25 + $0x10] sm:$0xff] %v2113_v59 }
 0xc60   : > { %2116 = vst [vmem:[%s2096_s25 + $0x18] sm:$0xff] %v2115_v63 }
 0xc64   : > { %v2121_v62 = vld [vmem:[%s3583_s20 + $0x30] sm:$0xff] }
 0xc65   : > { %v2123_v54 = vld [vmem:[%s3583_s20 + $0x38] sm:$0xff]  ;;  %2122 = vst [vmem:[%s2096_s25 + $0x50] sm:$0xff] %v2121_v62 }
 0xc66   : > { %2124 = vst [vmem:[%s2096_s25 + $0x58] sm:$0xff] %v2123_v54 }
 0xc67 PF: > { %p11_p10 = scmp.ge.s32.totalorder %s2833_s19, 4   ;;  %s3624_s15 = smov %s2780_s16 }
 0xc68   : > { %s3625_s16 = smov %s2844_s22  ;;  %s3626_s17 = smov %s2833_s19 }
 0xc69   :  { %13 = sbr.rel (!%p11_p10) target bundleno = 2 (0x2), region = 128 }

</bundles_post_ra>
